<compile_context>
chip_gen: v5e
topology: v5e:2x2
jax: 0.10.0
libtpu: 0.0.40
codegen_flags: <defaults>
</compile_context>

<pallas_src>
import math
import jax
import jax.numpy as jnp
from jax import lax
from jax.experimental import pallas as pl
from jax.experimental.pallas import tpu as pltpu


def _lstm_chunk_kernel(xg_ref, whh_ref, out_ref, cn_ref, h_sc, c_sc):
    """One grid step == Ts timesteps of the recurrence.

    xg_ref : (Ts, B_pad, 4*H_pad)  precomputed x @ W_ih^T + (b_ih + b_hh)
    whh_ref: (H_pad, 4*H_pad)      recurrent weights (resident, constant index)
    out_ref: (Ts, B_pad, H_pad)    h_t slab for this chunk (lane-dense stores)
    cn_ref : (B_pad, H_pad)        final cell state (written on last grid step)
    h_sc/c_sc: f32 state carried across grid steps
    """
    t = pl.program_id(0)

    @pl.when(t == 0)
    def _():
        h_sc[...] = jnp.zeros_like(h_sc)
        c_sc[...] = jnp.zeros_like(c_sc)

    H = h_sc.shape[-1]          # padded hidden (multiple of 128)
    ts = out_ref.shape[0]       # timesteps per chunk (static)
    whh = whh_ref[...]          # keep weight in vregs/VMEM for the whole chunk

    def step(i, carry):
        h_prev, c_prev = carry
        gates = xg_ref[i] + jnp.dot(h_prev, whh,
                                    preferred_element_type=jnp.float32)  # (B_pad, 4H)
        i_g = jax.nn.sigmoid(gates[:, 0 * H:1 * H])
        f_g = jax.nn.sigmoid(gates[:, 1 * H:2 * H])
        g_g = jnp.tanh(gates[:, 2 * H:3 * H])
        o_g = jax.nn.sigmoid(gates[:, 3 * H:4 * H])
        c_new = f_g * c_prev + i_g * g_g
        h_new = o_g * jnp.tanh(c_new)
        out_ref[i] = h_new.astype(out_ref.dtype)
        return h_new, c_new

    # Unrolled so the LLO scheduler can overlap EUP sigmoid/tanh of step t with
    # the MXU matmul of step t+1's independent pieces.
    h_fin, c_fin = lax.fori_loop(0, ts, step, (h_sc[...], c_sc[...]), unroll=True)

    h_sc[...] = h_fin
    c_sc[...] = c_fin

    @pl.when(t == pl.num_programs(0) - 1)
    def _():
        cn_ref[...] = c_fin.astype(cn_ref.dtype)


def _round_up(n, m):
    return (n + m - 1) // m * m


def _pick_time_chunk(S, max_chunk=32):
    """Largest divisor of S that is <= max_chunk (keeps unrolled loop modest)."""
    for ts in range(min(S, max_chunk), 0, -1):
        if S % ts == 0:
            return ts
    return 1


def _pad_gate_cols(w, H, H_pad):
    """Pad each of the 4 gate blocks along the last axis from H to H_pad with zeros.

    w: (..., 4*H) in gate order i,f,g,o  ->  (..., 4*H_pad)
    """
    lead = w.shape[:-1]
    w4 = w.reshape(*lead, 4, H)
    w4 = jnp.pad(w4, [(0, 0)] * len(lead) + [(0, 0), (0, H_pad - H)])
    return w4.reshape(*lead, 4 * H_pad)


def lstm_encoder_forward(x, w_ih, w_hh, b_ih, b_hh):
    """x: (batch, seq, input_size) float32 -> (lstm_out, (h_n, c_n))."""
    B, S, I = x.shape
    H = w_hh.shape[1]
    dtype = x.dtype

    B_pad = _round_up(max(B, 8), 8)        # sublane multiple
    H_pad = _round_up(max(H, 128), 128)    # lane multiple (lane-dense slices/stores)
    G = 4 * H_pad
    Ts = _pick_time_chunk(S)

    # ---- wrapper-side glue (pure XLA, outside the serial recurrence) --------
    x_tm = jnp.transpose(x, (1, 0, 2)).astype(jnp.float32)           # (S, B, I)
    x_tm = jnp.pad(x_tm, ((0, 0), (0, B_pad - B), (0, 0)))           # (S, B_pad, I)

    wih_t = _pad_gate_cols(jnp.transpose(w_ih, (1, 0)).astype(jnp.float32), H, H_pad)  # (I, G)
    whh_t = _pad_gate_cols(jnp.transpose(w_hh, (1, 0)).astype(jnp.float32), H, H_pad)  # (H, G)
    whh_t = jnp.pad(whh_t, ((0, H_pad - H), (0, 0)))                                   # (H_pad, G)
    bias = _pad_gate_cols((b_ih + b_hh).astype(jnp.float32), H, H_pad)                 # (G,)

    # Hoisted input projection: one big (S*B_pad, I) @ (I, 4H) matmul for all
    # timesteps instead of S tiny ones inside the recurrence.
    xg = jnp.einsum('sbi,ig->sbg', x_tm, wih_t,
                    preferred_element_type=jnp.float32) + bias        # (S, B_pad, G)

    grid_spec = pltpu.PrefetchScalarGridSpec(
        num_scalar_prefetch=0,
        grid=(S // Ts,),
        in_specs=[
            pl.BlockSpec((Ts, B_pad, G), lambda t: (t, 0, 0)),       # gate pre-activations
            pl.BlockSpec((H_pad, G), lambda t: (0, 0)),              # W_hh^T (resident)
            # TODO(synk): at production sizes, single-buffer the resident weight
            # (pipeline_mode=pl.Buffered(1)) and cast to bf16 to fit v7x's 64 MiB VMEM.
        ],
        out_specs=[
            pl.BlockSpec((Ts, B_pad, H_pad), lambda t: (t, 0, 0)),   # h slab (lane-dense)
            pl.BlockSpec((B_pad, H_pad), lambda t: (0, 0)),          # c_n (resident)
        ],
        scratch_shapes=[
            pltpu.VMEM((B_pad, H_pad), jnp.float32),   # h state
            pltpu.VMEM((B_pad, H_pad), jnp.float32),   # c state
        ],
    )

    out_tm, c_last = pl.pallas_call(
        _lstm_chunk_kernel,
        grid_spec=grid_spec,
        out_shape=(
            jax.ShapeDtypeStruct((S, B_pad, H_pad), jnp.float32),
            jax.ShapeDtypeStruct((B_pad, H_pad), jnp.float32),
        ),
        compiler_params=pltpu.CompilerParams(
            dimension_semantics=("arbitrary",),        # serial recurrence over time
            vmem_limit_bytes=48 * 1024 * 1024,         # above v5e's 16 MiB default, under v7x's 64 MiB
        ),
    )(xg, whh_t)

    lstm_out = jnp.transpose(out_tm[:, :B, :H], (1, 0, 2)).astype(dtype)   # (B, S, H)
    h_n = lstm_out[:, -1, :][None, :, :]                                   # == h at t=S-1
    c_n = c_last[:B, :H].astype(dtype)[None, :, :]
    return lstm_out, (h_n, c_n)


def _reference_lstm(x, w_ih, w_hh, b_ih, b_hh):
    """Pure-JAX reference matching torch.nn.LSTM semantics."""
    B, S, I = x.shape
    H = w_hh.shape[1]
    h = jnp.zeros((B, H), jnp.float32)
    c = jnp.zeros((B, H), jnp.float32)
    outs = []
    for t in range(S):
        g = x[:, t, :] @ w_ih.T + b_ih + h @ w_hh.T + b_hh
        i = jax.nn.sigmoid(g[:, 0 * H:1 * H])
        f = jax.nn.sigmoid(g[:, 1 * H:2 * H])
        gg = jnp.tanh(g[:, 2 * H:3 * H])
        o = jax.nn.sigmoid(g[:, 3 * H:4 * H])
        c = f * c + i * gg
        h = o * jnp.tanh(c)
        outs.append(h)
    return jnp.stack(outs, axis=1), (h[None], c[None])


if __name__ == "__main__":
    # Small shapes implied by the forward: x is (batch, seq, input_size).
    batch, seq, input_size, hidden_size = 2, 8, 4, 32

    key = jax.random.PRNGKey(0)
    kx, k1, k2, k3, k4 = jax.random.split(key, 5)

    x = jax.random.normal(kx, (batch, seq, input_size), dtype=jnp.float32)

    # Deterministic param init, same scheme as torch.nn.LSTM: U(-1/sqrt(H), 1/sqrt(H)).
    bound = 1.0 / math.sqrt(hidden_size)
    w_ih = jax.random.uniform(k1, (4 * hidden_size, input_size), jnp.float32, -bound, bound)
    w_hh = jax.random.uniform(k2, (4 * hidden_size, hidden_size), jnp.float32, -bound, bound)
    b_ih = jax.random.uniform(k3, (4 * hidden_size,), jnp.float32, -bound, bound)
    b_hh = jax.random.uniform(k4, (4 * hidden_size,), jnp.float32, -bound, bound)

    lstm_out, (h_n, c_n) = lstm_encoder_forward(x, w_ih, w_hh, b_ih, b_hh)
    jax.block_until_ready((lstm_out, h_n, c_n))

    # Correctness check against pure-JAX reference.
    ref_out, (ref_h, ref_c) = _reference_lstm(x, w_ih, w_hh, b_ih, b_hh)
    assert lstm_out.shape == (batch, seq, hidden_size)
    assert h_n.shape == (1, batch, hidden_size) and c_n.shape == (1, batch, hidden_size)
    assert jnp.allclose(lstm_out, ref_out, atol=1e-5, rtol=1e-5)
    assert jnp.allclose(h_n, ref_h, atol=1e-5, rtol=1e-5)
    assert jnp.allclose(c_n, ref_c, atol=1e-5, rtol=1e-5)

    print("KERNEL_OK")
</pallas_src>

<mosaic_0001>
module attributes {stable_mosaic.version = 11 : i64} {
  func.func @_lstm_chunk_kernel(%arg0: i32, %arg1: memref<8x8x512xf32, #tpu.memory_space<vmem>>, %arg2: memref<128x512xf32, #tpu.memory_space<vmem>>, %arg3: memref<8x8x128xf32, #tpu.memory_space<vmem>>, %arg4: memref<8x128xf32, #tpu.memory_space<vmem>>, %arg5: memref<8x128xf32, #tpu.memory_space<vmem>>, %arg6: memref<8x128xf32, #tpu.memory_space<vmem>>) attributes {dimension_semantics = [#tpu.dimension_semantics<arbitrary>], iteration_bounds = array<i64: 1>, scalar_prefetch = 0 : i64, scratch_operands = 2 : i64, tpu.core_type = #tpu.core_type<tc>, window_params = [{transform_indices = @transform_0, window_bounds = array<i64: 8, 8, 512>}, {pipeline_mode = #tpu.pipeline_mode<synchronous>, transform_indices = @transform_1, window_bounds = array<i64: 128, 512>}, {transform_indices = @transform_2, window_bounds = array<i64: 8, 8, 128>}, {pipeline_mode = #tpu.pipeline_mode<synchronous>, transform_indices = @transform_3, window_bounds = array<i64: 8, 128>}]} {
    %c0_i32 = arith.constant 0 : i32
    %0 = arith.cmpi eq, %arg0, %c0_i32 : i32
    %1 = arith.extui %0 : i1 to i32
    %c0_i32_0 = arith.constant 0 : i32
    %2 = arith.cmpi ne, %1, %c0_i32_0 : i32
    scf.if %2 {
      %cst_76 = arith.constant 0.000000e+00 : f32
      %283 = vector.broadcast %cst_76 : f32 to vector<8x128xf32>
      %c0_77 = arith.constant 0 : index
      %c0_78 = arith.constant 0 : index
      %284 = vector.load %arg5[%c0_77, %c0_78] : memref<8x128xf32, #tpu.memory_space<vmem>>, vector<8x128xf32>
      tpu.vector_store %arg5[%c0_77, %c0_78], %283 {strides = array<i32>} : memref<8x128xf32, #tpu.memory_space<vmem>>, vector<8x128xf32>,
      %cst_79 = arith.constant 0.000000e+00 : f32
      %285 = vector.broadcast %cst_79 : f32 to vector<8x128xf32>
      %c0_80 = arith.constant 0 : index
      %c0_81 = arith.constant 0 : index
      %286 = vector.load %arg6[%c0_80, %c0_81] : memref<8x128xf32, #tpu.memory_space<vmem>>, vector<8x128xf32>
      tpu.vector_store %arg6[%c0_80, %c0_81], %285 {strides = array<i32>} : memref<8x128xf32, #tpu.memory_space<vmem>>, vector<8x128xf32>,
    } else {
    }
    %c0 = arith.constant 0 : index
    %c0_1 = arith.constant 0 : index
    %3 = vector.load %arg2[%c0, %c0_1] : memref<128x512xf32, #tpu.memory_space<vmem>>, vector<128x512xf32>
    %c0_2 = arith.constant 0 : index
    %c0_3 = arith.constant 0 : index
    %4 = vector.load %arg5[%c0_2, %c0_3] : memref<8x128xf32, #tpu.memory_space<vmem>>, vector<8x128xf32>
    %c0_4 = arith.constant 0 : index
    %c0_5 = arith.constant 0 : index
    %5 = vector.load %arg6[%c0_4, %c0_5] : memref<8x128xf32, #tpu.memory_space<vmem>>, vector<8x128xf32>
    %c0_i32_6 = arith.constant 0 : i32
    %6 = arith.index_cast %c0_i32_6 : i32 to index
    %c0_7 = arith.constant 0 : index
    %c0_8 = arith.constant 0 : index
    %7 = vector.load %arg1[%6, %c0_7, %c0_8] : memref<8x8x512xf32, #tpu.memory_space<vmem>>, vector<1x8x512xf32>
    %8 = vector.shape_cast %7 : vector<1x8x512xf32> to vector<8x512xf32>
    %cst = arith.constant dense<0.000000e+00> : vector<8x512xf32>
    %9 = tpu.matmul %4, %3, %cst {dimension_numbers = #tpu.dot_dimension_numbers<[1], [0], [0], [1], [0, 0, 1, 1], [], []>} : vector<8x128xf32>, vector<128x512xf32>, vector<8x512xf32> -> vector<8x512xf32>
    %10 = arith.addf %8, %9 : vector<8x512xf32>
    %11 = vector.extract_strided_slice %10 {offsets = [0, 0], sizes = [8, 128], strides = [1, 1]} : vector<8x512xf32> to vector<8x128xf32>
    %12 = arith.negf %11 : vector<8x128xf32>
    %13 = math.exp %12 : vector<8x128xf32>
    %cst_9 = arith.constant 1.000000e+00 : f32
    %14 = vector.broadcast %cst_9 : f32 to vector<8x128xf32>
    %15 = arith.addf %14, %13 : vector<8x128xf32>
    %16 = arith.divf %14, %15 : vector<8x128xf32>
    %17 = vector.extract_strided_slice %10 {offsets = [0, 128], sizes = [8, 128], strides = [1, 1]} : vector<8x512xf32> to vector<8x128xf32>
    %18 = arith.negf %17 : vector<8x128xf32>
    %19 = math.exp %18 : vector<8x128xf32>
    %cst_10 = arith.constant 1.000000e+00 : f32
    %20 = vector.broadcast %cst_10 : f32 to vector<8x128xf32>
    %21 = arith.addf %20, %19 : vector<8x128xf32>
    %22 = arith.divf %20, %21 : vector<8x128xf32>
    %23 = vector.extract_strided_slice %10 {offsets = [0, 256], sizes = [8, 128], strides = [1, 1]} : vector<8x512xf32> to vector<8x128xf32>
    %24 = math.tanh %23 : vector<8x128xf32>
    %25 = vector.extract_strided_slice %10 {offsets = [0, 384], sizes = [8, 128], strides = [1, 1]} : vector<8x512xf32> to vector<8x128xf32>
    %26 = arith.negf %25 : vector<8x128xf32>
    %27 = math.exp %26 : vector<8x128xf32>
    %cst_11 = arith.constant 1.000000e+00 : f32
    %28 = vector.broadcast %cst_11 : f32 to vector<8x128xf32>
    %29 = arith.addf %28, %27 : vector<8x128xf32>
    %30 = arith.divf %28, %29 : vector<8x128xf32>
    %31 = arith.mulf %22, %5 : vector<8x128xf32>
    %32 = arith.mulf %16, %24 : vector<8x128xf32>
    %33 = arith.addf %31, %32 : vector<8x128xf32>
    %34 = math.tanh %33 : vector<8x128xf32>
    %35 = arith.mulf %30, %34 : vector<8x128xf32>
    %36 = arith.index_cast %c0_i32_6 : i32 to index
    %c0_12 = arith.constant 0 : index
    %c0_13 = arith.constant 0 : index
    %37 = vector.load %arg3[%36, %c0_12, %c0_13] : memref<8x8x128xf32, #tpu.memory_space<vmem>>, vector<1x8x128xf32>
    %38 = vector.shape_cast %37 : vector<1x8x128xf32> to vector<8x128xf32>
    %39 = vector.shape_cast %35 : vector<8x128xf32> to vector<1x8x128xf32>
    tpu.vector_store %arg3[%36, %c0_12, %c0_13], %39 {strides = array<i32>} : memref<8x8x128xf32, #tpu.memory_space<vmem>>, vector<1x8x128xf32>,
    %c1_i32 = arith.constant 1 : i32
    %40 = arith.index_cast %c1_i32 : i32 to index
    %c0_14 = arith.constant 0 : index
    %c0_15 = arith.constant 0 : index
    %41 = vector.load %arg1[%40, %c0_14, %c0_15] : memref<8x8x512xf32, #tpu.memory_space<vmem>>, vector<1x8x512xf32>
    %42 = vector.shape_cast %41 : vector<1x8x512xf32> to vector<8x512xf32>
    %cst_16 = arith.constant dense<0.000000e+00> : vector<8x512xf32>
    %43 = tpu.matmul %35, %3, %cst_16 {dimension_numbers = #tpu.dot_dimension_numbers<[1], [0], [0], [1], [0, 0, 1, 1], [], []>} : vector<8x128xf32>, vector<128x512xf32>, vector<8x512xf32> -> vector<8x512xf32>
    %44 = arith.addf %42, %43 : vector<8x512xf32>
    %45 = vector.extract_strided_slice %44 {offsets = [0, 0], sizes = [8, 128], strides = [1, 1]} : vector<8x512xf32> to vector<8x128xf32>
    %46 = arith.negf %45 : vector<8x128xf32>
    %47 = math.exp %46 : vector<8x128xf32>
    %cst_17 = arith.constant 1.000000e+00 : f32
    %48 = vector.broadcast %cst_17 : f32 to vector<8x128xf32>
    %49 = arith.addf %48, %47 : vector<8x128xf32>
    %50 = arith.divf %48, %49 : vector<8x128xf32>
    %51 = vector.extract_strided_slice %44 {offsets = [0, 128], sizes = [8, 128], strides = [1, 1]} : vector<8x512xf32> to vector<8x128xf32>
    %52 = arith.negf %51 : vector<8x128xf32>
    %53 = math.exp %52 : vector<8x128xf32>
    %cst_18 = arith.constant 1.000000e+00 : f32
    %54 = vector.broadcast %cst_18 : f32 to vector<8x128xf32>
    %55 = arith.addf %54, %53 : vector<8x128xf32>
    %56 = arith.divf %54, %55 : vector<8x128xf32>
    %57 = vector.extract_strided_slice %44 {offsets = [0, 256], sizes = [8, 128], strides = [1, 1]} : vector<8x512xf32> to vector<8x128xf32>
    %58 = math.tanh %57 : vector<8x128xf32>
    %59 = vector.extract_strided_slice %44 {offsets = [0, 384], sizes = [8, 128], strides = [1, 1]} : vector<8x512xf32> to vector<8x128xf32>
    %60 = arith.negf %59 : vector<8x128xf32>
    %61 = math.exp %60 : vector<8x128xf32>
    %cst_19 = arith.constant 1.000000e+00 : f32
    %62 = vector.broadcast %cst_19 : f32 to vector<8x128xf32>
    %63 = arith.addf %62, %61 : vector<8x128xf32>
    %64 = arith.divf %62, %63 : vector<8x128xf32>
    %65 = arith.mulf %56, %33 : vector<8x128xf32>
    %66 = arith.mulf %50, %58 : vector<8x128xf32>
    %67 = arith.addf %65, %66 : vector<8x128xf32>
    %68 = math.tanh %67 : vector<8x128xf32>
    %69 = arith.mulf %64, %68 : vector<8x128xf32>
    %70 = arith.index_cast %c1_i32 : i32 to index
    %c0_20 = arith.constant 0 : index
    %c0_21 = arith.constant 0 : index
    %71 = vector.load %arg3[%70, %c0_20, %c0_21] : memref<8x8x128xf32, #tpu.memory_space<vmem>>, vector<1x8x128xf32>
    %72 = vector.shape_cast %71 : vector<1x8x128xf32> to vector<8x128xf32>
    %73 = vector.shape_cast %69 : vector<8x128xf32> to vector<1x8x128xf32>
    tpu.vector_store %arg3[%70, %c0_20, %c0_21], %73 {strides = array<i32>} : memref<8x8x128xf32, #tpu.memory_space<vmem>>, vector<1x8x128xf32>,
    %c2_i32 = arith.constant 2 : i32
    %74 = arith.index_cast %c2_i32 : i32 to index
    %c0_22 = arith.constant 0 : index
    %c0_23 = arith.constant 0 : index
    %75 = vector.load %arg1[%74, %c0_22, %c0_23] : memref<8x8x512xf32, #tpu.memory_space<vmem>>, vector<1x8x512xf32>
    %76 = vector.shape_cast %75 : vector<1x8x512xf32> to vector<8x512xf32>
    %cst_24 = arith.constant dense<0.000000e+00> : vector<8x512xf32>
    %77 = tpu.matmul %69, %3, %cst_24 {dimension_numbers = #tpu.dot_dimension_numbers<[1], [0], [0], [1], [0, 0, 1, 1], [], []>} : vector<8x128xf32>, vector<128x512xf32>, vector<8x512xf32> -> vector<8x512xf32>
    %78 = arith.addf %76, %77 : vector<8x512xf32>
    %79 = vector.extract_strided_slice %78 {offsets = [0, 0], sizes = [8, 128], strides = [1, 1]} : vector<8x512xf32> to vector<8x128xf32>
    %80 = arith.negf %79 : vector<8x128xf32>
    %81 = math.exp %80 : vector<8x128xf32>
    %cst_25 = arith.constant 1.000000e+00 : f32
    %82 = vector.broadcast %cst_25 : f32 to vector<8x128xf32>
    %83 = arith.addf %82, %81 : vector<8x128xf32>
    %84 = arith.divf %82, %83 : vector<8x128xf32>
    %85 = vector.extract_strided_slice %78 {offsets = [0, 128], sizes = [8, 128], strides = [1, 1]} : vector<8x512xf32> to vector<8x128xf32>
    %86 = arith.negf %85 : vector<8x128xf32>
    %87 = math.exp %86 : vector<8x128xf32>
    %cst_26 = arith.constant 1.000000e+00 : f32
    %88 = vector.broadcast %cst_26 : f32 to vector<8x128xf32>
    %89 = arith.addf %88, %87 : vector<8x128xf32>
    %90 = arith.divf %88, %89 : vector<8x128xf32>
    %91 = vector.extract_strided_slice %78 {offsets = [0, 256], sizes = [8, 128], strides = [1, 1]} : vector<8x512xf32> to vector<8x128xf32>
    %92 = math.tanh %91 : vector<8x128xf32>
    %93 = vector.extract_strided_slice %78 {offsets = [0, 384], sizes = [8, 128], strides = [1, 1]} : vector<8x512xf32> to vector<8x128xf32>
    %94 = arith.negf %93 : vector<8x128xf32>
    %95 = math.exp %94 : vector<8x128xf32>
    %cst_27 = arith.constant 1.000000e+00 : f32
    %96 = vector.broadcast %cst_27 : f32 to vector<8x128xf32>
    %97 = arith.addf %96, %95 : vector<8x128xf32>
    %98 = arith.divf %96, %97 : vector<8x128xf32>
    %99 = arith.mulf %90, %67 : vector<8x128xf32>
    %100 = arith.mulf %84, %92 : vector<8x128xf32>
    %101 = arith.addf %99, %100 : vector<8x128xf32>
    %102 = math.tanh %101 : vector<8x128xf32>
    %103 = arith.mulf %98, %102 : vector<8x128xf32>
    %104 = arith.index_cast %c2_i32 : i32 to index
    %c0_28 = arith.constant 0 : index
    %c0_29 = arith.constant 0 : index
    %105 = vector.load %arg3[%104, %c0_28, %c0_29] : memref<8x8x128xf32, #tpu.memory_space<vmem>>, vector<1x8x128xf32>
    %106 = vector.shape_cast %105 : vector<1x8x128xf32> to vector<8x128xf32>
    %107 = vector.shape_cast %103 : vector<8x128xf32> to vector<1x8x128xf32>
    tpu.vector_store %arg3[%104, %c0_28, %c0_29], %107 {strides = array<i32>} : memref<8x8x128xf32, #tpu.memory_space<vmem>>, vector<1x8x128xf32>,
    %c3_i32 = arith.constant 3 : i32
    %108 = arith.index_cast %c3_i32 : i32 to index
    %c0_30 = arith.constant 0 : index
    %c0_31 = arith.constant 0 : index
    %109 = vector.load %arg1[%108, %c0_30, %c0_31] : memref<8x8x512xf32, #tpu.memory_space<vmem>>, vector<1x8x512xf32>
    %110 = vector.shape_cast %109 : vector<1x8x512xf32> to vector<8x512xf32>
    %cst_32 = arith.constant dense<0.000000e+00> : vector<8x512xf32>
    %111 = tpu.matmul %103, %3, %cst_32 {dimension_numbers = #tpu.dot_dimension_numbers<[1], [0], [0], [1], [0, 0, 1, 1], [], []>} : vector<8x128xf32>, vector<128x512xf32>, vector<8x512xf32> -> vector<8x512xf32>
    %112 = arith.addf %110, %111 : vector<8x512xf32>
    %113 = vector.extract_strided_slice %112 {offsets = [0, 0], sizes = [8, 128], strides = [1, 1]} : vector<8x512xf32> to vector<8x128xf32>
    %114 = arith.negf %113 : vector<8x128xf32>
    %115 = math.exp %114 : vector<8x128xf32>
    %cst_33 = arith.constant 1.000000e+00 : f32
    %116 = vector.broadcast %cst_33 : f32 to vector<8x128xf32>
    %117 = arith.addf %116, %115 : vector<8x128xf32>
    %118 = arith.divf %116, %117 : vector<8x128xf32>
    %119 = vector.extract_strided_slice %112 {offsets = [0, 128], sizes = [8, 128], strides = [1, 1]} : vector<8x512xf32> to vector<8x128xf32>
    %120 = arith.negf %119 : vector<8x128xf32>
    %121 = math.exp %120 : vector<8x128xf32>
    %cst_34 = arith.constant 1.000000e+00 : f32
    %122 = vector.broadcast %cst_34 : f32 to vector<8x128xf32>
    %123 = arith.addf %122, %121 : vector<8x128xf32>
    %124 = arith.divf %122, %123 : vector<8x128xf32>
    %125 = vector.extract_strided_slice %112 {offsets = [0, 256], sizes = [8, 128], strides = [1, 1]} : vector<8x512xf32> to vector<8x128xf32>
    %126 = math.tanh %125 : vector<8x128xf32>
    %127 = vector.extract_strided_slice %112 {offsets = [0, 384], sizes = [8, 128], strides = [1, 1]} : vector<8x512xf32> to vector<8x128xf32>
    %128 = arith.negf %127 : vector<8x128xf32>
    %129 = math.exp %128 : vector<8x128xf32>
    %cst_35 = arith.constant 1.000000e+00 : f32
    %130 = vector.broadcast %cst_35 : f32 to vector<8x128xf32>
    %131 = arith.addf %130, %129 : vector<8x128xf32>
    %132 = arith.divf %130, %131 : vector<8x128xf32>
    %133 = arith.mulf %124, %101 : vector<8x128xf32>
    %134 = arith.mulf %118, %126 : vector<8x128xf32>
    %135 = arith.addf %133, %134 : vector<8x128xf32>
    %136 = math.tanh %135 : vector<8x128xf32>
    %137 = arith.mulf %132, %136 : vector<8x128xf32>
    %138 = arith.index_cast %c3_i32 : i32 to index
    %c0_36 = arith.constant 0 : index
    %c0_37 = arith.constant 0 : index
    %139 = vector.load %arg3[%138, %c0_36, %c0_37] : memref<8x8x128xf32, #tpu.memory_space<vmem>>, vector<1x8x128xf32>
    %140 = vector.shape_cast %139 : vector<1x8x128xf32> to vector<8x128xf32>
    %141 = vector.shape_cast %137 : vector<8x128xf32> to vector<1x8x128xf32>
    tpu.vector_store %arg3[%138, %c0_36, %c0_37], %141 {strides = array<i32>} : memref<8x8x128xf32, #tpu.memory_space<vmem>>, vector<1x8x128xf32>,
    %c4_i32 = arith.constant 4 : i32
    %142 = arith.index_cast %c4_i32 : i32 to index
    %c0_38 = arith.constant 0 : index
    %c0_39 = arith.constant 0 : index
    %143 = vector.load %arg1[%142, %c0_38, %c0_39] : memref<8x8x512xf32, #tpu.memory_space<vmem>>, vector<1x8x512xf32>
    %144 = vector.shape_cast %143 : vector<1x8x512xf32> to vector<8x512xf32>
    %cst_40 = arith.constant dense<0.000000e+00> : vector<8x512xf32>
    %145 = tpu.matmul %137, %3, %cst_40 {dimension_numbers = #tpu.dot_dimension_numbers<[1], [0], [0], [1], [0, 0, 1, 1], [], []>} : vector<8x128xf32>, vector<128x512xf32>, vector<8x512xf32> -> vector<8x512xf32>
    %146 = arith.addf %144, %145 : vector<8x512xf32>
    %147 = vector.extract_strided_slice %146 {offsets = [0, 0], sizes = [8, 128], strides = [1, 1]} : vector<8x512xf32> to vector<8x128xf32>
    %148 = arith.negf %147 : vector<8x128xf32>
    %149 = math.exp %148 : vector<8x128xf32>
    %cst_41 = arith.constant 1.000000e+00 : f32
    %150 = vector.broadcast %cst_41 : f32 to vector<8x128xf32>
    %151 = arith.addf %150, %149 : vector<8x128xf32>
    %152 = arith.divf %150, %151 : vector<8x128xf32>
    %153 = vector.extract_strided_slice %146 {offsets = [0, 128], sizes = [8, 128], strides = [1, 1]} : vector<8x512xf32> to vector<8x128xf32>
    %154 = arith.negf %153 : vector<8x128xf32>
    %155 = math.exp %154 : vector<8x128xf32>
    %cst_42 = arith.constant 1.000000e+00 : f32
    %156 = vector.broadcast %cst_42 : f32 to vector<8x128xf32>
    %157 = arith.addf %156, %155 : vector<8x128xf32>
    %158 = arith.divf %156, %157 : vector<8x128xf32>
    %159 = vector.extract_strided_slice %146 {offsets = [0, 256], sizes = [8, 128], strides = [1, 1]} : vector<8x512xf32> to vector<8x128xf32>
    %160 = math.tanh %159 : vector<8x128xf32>
    %161 = vector.extract_strided_slice %146 {offsets = [0, 384], sizes = [8, 128], strides = [1, 1]} : vector<8x512xf32> to vector<8x128xf32>
    %162 = arith.negf %161 : vector<8x128xf32>
    %163 = math.exp %162 : vector<8x128xf32>
    %cst_43 = arith.constant 1.000000e+00 : f32
    %164 = vector.broadcast %cst_43 : f32 to vector<8x128xf32>
    %165 = arith.addf %164, %163 : vector<8x128xf32>
    %166 = arith.divf %164, %165 : vector<8x128xf32>
    %167 = arith.mulf %158, %135 : vector<8x128xf32>
    %168 = arith.mulf %152, %160 : vector<8x128xf32>
    %169 = arith.addf %167, %168 : vector<8x128xf32>
    %170 = math.tanh %169 : vector<8x128xf32>
    %171 = arith.mulf %166, %170 : vector<8x128xf32>
    %172 = arith.index_cast %c4_i32 : i32 to index
    %c0_44 = arith.constant 0 : index
    %c0_45 = arith.constant 0 : index
    %173 = vector.load %arg3[%172, %c0_44, %c0_45] : memref<8x8x128xf32, #tpu.memory_space<vmem>>, vector<1x8x128xf32>
    %174 = vector.shape_cast %173 : vector<1x8x128xf32> to vector<8x128xf32>
    %175 = vector.shape_cast %171 : vector<8x128xf32> to vector<1x8x128xf32>
    tpu.vector_store %arg3[%172, %c0_44, %c0_45], %175 {strides = array<i32>} : memref<8x8x128xf32, #tpu.memory_space<vmem>>, vector<1x8x128xf32>,
    %c5_i32 = arith.constant 5 : i32
    %176 = arith.index_cast %c5_i32 : i32 to index
    %c0_46 = arith.constant 0 : index
    %c0_47 = arith.constant 0 : index
    %177 = vector.load %arg1[%176, %c0_46, %c0_47] : memref<8x8x512xf32, #tpu.memory_space<vmem>>, vector<1x8x512xf32>
    %178 = vector.shape_cast %177 : vector<1x8x512xf32> to vector<8x512xf32>
    %cst_48 = arith.constant dense<0.000000e+00> : vector<8x512xf32>
    %179 = tpu.matmul %171, %3, %cst_48 {dimension_numbers = #tpu.dot_dimension_numbers<[1], [0], [0], [1], [0, 0, 1, 1], [], []>} : vector<8x128xf32>, vector<128x512xf32>, vector<8x512xf32> -> vector<8x512xf32>
    %180 = arith.addf %178, %179 : vector<8x512xf32>
    %181 = vector.extract_strided_slice %180 {offsets = [0, 0], sizes = [8, 128], strides = [1, 1]} : vector<8x512xf32> to vector<8x128xf32>
    %182 = arith.negf %181 : vector<8x128xf32>
    %183 = math.exp %182 : vector<8x128xf32>
    %cst_49 = arith.constant 1.000000e+00 : f32
    %184 = vector.broadcast %cst_49 : f32 to vector<8x128xf32>
    %185 = arith.addf %184, %183 : vector<8x128xf32>
    %186 = arith.divf %184, %185 : vector<8x128xf32>
    %187 = vector.extract_strided_slice %180 {offsets = [0, 128], sizes = [8, 128], strides = [1, 1]} : vector<8x512xf32> to vector<8x128xf32>
    %188 = arith.negf %187 : vector<8x128xf32>
    %189 = math.exp %188 : vector<8x128xf32>
    %cst_50 = arith.constant 1.000000e+00 : f32
    %190 = vector.broadcast %cst_50 : f32 to vector<8x128xf32>
    %191 = arith.addf %190, %189 : vector<8x128xf32>
    %192 = arith.divf %190, %191 : vector<8x128xf32>
    %193 = vector.extract_strided_slice %180 {offsets = [0, 256], sizes = [8, 128], strides = [1, 1]} : vector<8x512xf32> to vector<8x128xf32>
    %194 = math.tanh %193 : vector<8x128xf32>
    %195 = vector.extract_strided_slice %180 {offsets = [0, 384], sizes = [8, 128], strides = [1, 1]} : vector<8x512xf32> to vector<8x128xf32>
    %196 = arith.negf %195 : vector<8x128xf32>
    %197 = math.exp %196 : vector<8x128xf32>
    %cst_51 = arith.constant 1.000000e+00 : f32
    %198 = vector.broadcast %cst_51 : f32 to vector<8x128xf32>
    %199 = arith.addf %198, %197 : vector<8x128xf32>
    %200 = arith.divf %198, %199 : vector<8x128xf32>
    %201 = arith.mulf %192, %169 : vector<8x128xf32>
    %202 = arith.mulf %186, %194 : vector<8x128xf32>
    %203 = arith.addf %201, %202 : vector<8x128xf32>
    %204 = math.tanh %203 : vector<8x128xf32>
    %205 = arith.mulf %200, %204 : vector<8x128xf32>
    %206 = arith.index_cast %c5_i32 : i32 to index
    %c0_52 = arith.constant 0 : index
    %c0_53 = arith.constant 0 : index
    %207 = vector.load %arg3[%206, %c0_52, %c0_53] : memref<8x8x128xf32, #tpu.memory_space<vmem>>, vector<1x8x128xf32>
    %208 = vector.shape_cast %207 : vector<1x8x128xf32> to vector<8x128xf32>
    %209 = vector.shape_cast %205 : vector<8x128xf32> to vector<1x8x128xf32>
    tpu.vector_store %arg3[%206, %c0_52, %c0_53], %209 {strides = array<i32>} : memref<8x8x128xf32, #tpu.memory_space<vmem>>, vector<1x8x128xf32>,
    %c6_i32 = arith.constant 6 : i32
    %210 = arith.index_cast %c6_i32 : i32 to index
    %c0_54 = arith.constant 0 : index
    %c0_55 = arith.constant 0 : index
    %211 = vector.load %arg1[%210, %c0_54, %c0_55] : memref<8x8x512xf32, #tpu.memory_space<vmem>>, vector<1x8x512xf32>
    %212 = vector.shape_cast %211 : vector<1x8x512xf32> to vector<8x512xf32>
    %cst_56 = arith.constant dense<0.000000e+00> : vector<8x512xf32>
    %213 = tpu.matmul %205, %3, %cst_56 {dimension_numbers = #tpu.dot_dimension_numbers<[1], [0], [0], [1], [0, 0, 1, 1], [], []>} : vector<8x128xf32>, vector<128x512xf32>, vector<8x512xf32> -> vector<8x512xf32>
    %214 = arith.addf %212, %213 : vector<8x512xf32>
    %215 = vector.extract_strided_slice %214 {offsets = [0, 0], sizes = [8, 128], strides = [1, 1]} : vector<8x512xf32> to vector<8x128xf32>
    %216 = arith.negf %215 : vector<8x128xf32>
    %217 = math.exp %216 : vector<8x128xf32>
    %cst_57 = arith.constant 1.000000e+00 : f32
    %218 = vector.broadcast %cst_57 : f32 to vector<8x128xf32>
    %219 = arith.addf %218, %217 : vector<8x128xf32>
    %220 = arith.divf %218, %219 : vector<8x128xf32>
    %221 = vector.extract_strided_slice %214 {offsets = [0, 128], sizes = [8, 128], strides = [1, 1]} : vector<8x512xf32> to vector<8x128xf32>
    %222 = arith.negf %221 : vector<8x128xf32>
    %223 = math.exp %222 : vector<8x128xf32>
    %cst_58 = arith.constant 1.000000e+00 : f32
    %224 = vector.broadcast %cst_58 : f32 to vector<8x128xf32>
    %225 = arith.addf %224, %223 : vector<8x128xf32>
    %226 = arith.divf %224, %225 : vector<8x128xf32>
    %227 = vector.extract_strided_slice %214 {offsets = [0, 256], sizes = [8, 128], strides = [1, 1]} : vector<8x512xf32> to vector<8x128xf32>
    %228 = math.tanh %227 : vector<8x128xf32>
    %229 = vector.extract_strided_slice %214 {offsets = [0, 384], sizes = [8, 128], strides = [1, 1]} : vector<8x512xf32> to vector<8x128xf32>
    %230 = arith.negf %229 : vector<8x128xf32>
    %231 = math.exp %230 : vector<8x128xf32>
    %cst_59 = arith.constant 1.000000e+00 : f32
    %232 = vector.broadcast %cst_59 : f32 to vector<8x128xf32>
    %233 = arith.addf %232, %231 : vector<8x128xf32>
    %234 = arith.divf %232, %233 : vector<8x128xf32>
    %235 = arith.mulf %226, %203 : vector<8x128xf32>
    %236 = arith.mulf %220, %228 : vector<8x128xf32>
    %237 = arith.addf %235, %236 : vector<8x128xf32>
    %238 = math.tanh %237 : vector<8x128xf32>
    %239 = arith.mulf %234, %238 : vector<8x128xf32>
    %240 = arith.index_cast %c6_i32 : i32 to index
    %c0_60 = arith.constant 0 : index
    %c0_61 = arith.constant 0 : index
    %241 = vector.load %arg3[%240, %c0_60, %c0_61] : memref<8x8x128xf32, #tpu.memory_space<vmem>>, vector<1x8x128xf32>
    %242 = vector.shape_cast %241 : vector<1x8x128xf32> to vector<8x128xf32>
    %243 = vector.shape_cast %239 : vector<8x128xf32> to vector<1x8x128xf32>
    tpu.vector_store %arg3[%240, %c0_60, %c0_61], %243 {strides = array<i32>} : memref<8x8x128xf32, #tpu.memory_space<vmem>>, vector<1x8x128xf32>,
    %c7_i32 = arith.constant 7 : i32
    %244 = arith.index_cast %c7_i32 : i32 to index
    %c0_62 = arith.constant 0 : index
    %c0_63 = arith.constant 0 : index
    %245 = vector.load %arg1[%244, %c0_62, %c0_63] : memref<8x8x512xf32, #tpu.memory_space<vmem>>, vector<1x8x512xf32>
    %246 = vector.shape_cast %245 : vector<1x8x512xf32> to vector<8x512xf32>
    %cst_64 = arith.constant dense<0.000000e+00> : vector<8x512xf32>
    %247 = tpu.matmul %239, %3, %cst_64 {dimension_numbers = #tpu.dot_dimension_numbers<[1], [0], [0], [1], [0, 0, 1, 1], [], []>} : vector<8x128xf32>, vector<128x512xf32>, vector<8x512xf32> -> vector<8x512xf32>
    %248 = arith.addf %246, %247 : vector<8x512xf32>
    %249 = vector.extract_strided_slice %248 {offsets = [0, 0], sizes = [8, 128], strides = [1, 1]} : vector<8x512xf32> to vector<8x128xf32>
    %250 = arith.negf %249 : vector<8x128xf32>
    %251 = math.exp %250 : vector<8x128xf32>
    %cst_65 = arith.constant 1.000000e+00 : f32
    %252 = vector.broadcast %cst_65 : f32 to vector<8x128xf32>
    %253 = arith.addf %252, %251 : vector<8x128xf32>
    %254 = arith.divf %252, %253 : vector<8x128xf32>
    %255 = vector.extract_strided_slice %248 {offsets = [0, 128], sizes = [8, 128], strides = [1, 1]} : vector<8x512xf32> to vector<8x128xf32>
    %256 = arith.negf %255 : vector<8x128xf32>
    %257 = math.exp %256 : vector<8x128xf32>
    %cst_66 = arith.constant 1.000000e+00 : f32
    %258 = vector.broadcast %cst_66 : f32 to vector<8x128xf32>
    %259 = arith.addf %258, %257 : vector<8x128xf32>
    %260 = arith.divf %258, %259 : vector<8x128xf32>
    %261 = vector.extract_strided_slice %248 {offsets = [0, 256], sizes = [8, 128], strides = [1, 1]} : vector<8x512xf32> to vector<8x128xf32>
    %262 = math.tanh %261 : vector<8x128xf32>
    %263 = vector.extract_strided_slice %248 {offsets = [0, 384], sizes = [8, 128], strides = [1, 1]} : vector<8x512xf32> to vector<8x128xf32>
    %264 = arith.negf %263 : vector<8x128xf32>
    %265 = math.exp %264 : vector<8x128xf32>
    %cst_67 = arith.constant 1.000000e+00 : f32
    %266 = vector.broadcast %cst_67 : f32 to vector<8x128xf32>
    %267 = arith.addf %266, %265 : vector<8x128xf32>
    %268 = arith.divf %266, %267 : vector<8x128xf32>
    %269 = arith.mulf %260, %237 : vector<8x128xf32>
    %270 = arith.mulf %254, %262 : vector<8x128xf32>
    %271 = arith.addf %269, %270 : vector<8x128xf32>
    %272 = math.tanh %271 : vector<8x128xf32>
    %273 = arith.mulf %268, %272 : vector<8x128xf32>
    %274 = arith.index_cast %c7_i32 : i32 to index
    %c0_68 = arith.constant 0 : index
    %c0_69 = arith.constant 0 : index
    %275 = vector.load %arg3[%274, %c0_68, %c0_69] : memref<8x8x128xf32, #tpu.memory_space<vmem>>, vector<1x8x128xf32>
    %276 = vector.shape_cast %275 : vector<1x8x128xf32> to vector<8x128xf32>
    %277 = vector.shape_cast %273 : vector<8x128xf32> to vector<1x8x128xf32>
    tpu.vector_store %arg3[%274, %c0_68, %c0_69], %277 {strides = array<i32>} : memref<8x8x128xf32, #tpu.memory_space<vmem>>, vector<1x8x128xf32>,
    %c8_i32 = arith.constant 8 : i32
    %c0_70 = arith.constant 0 : index
    %c0_71 = arith.constant 0 : index
    %278 = vector.load %arg5[%c0_70, %c0_71] : memref<8x128xf32, #tpu.memory_space<vmem>>, vector<8x128xf32>
    tpu.vector_store %arg5[%c0_70, %c0_71], %273 {strides = array<i32>} : memref<8x128xf32, #tpu.memory_space<vmem>>, vector<8x128xf32>,
    %c0_72 = arith.constant 0 : index
    %c0_73 = arith.constant 0 : index
    %279 = vector.load %arg6[%c0_72, %c0_73] : memref<8x128xf32, #tpu.memory_space<vmem>>, vector<8x128xf32>
    tpu.vector_store %arg6[%c0_72, %c0_73], %271 {strides = array<i32>} : memref<8x128xf32, #tpu.memory_space<vmem>>, vector<8x128xf32>,
    %c0_i32_74 = arith.constant 0 : i32
    %280 = arith.cmpi eq, %arg0, %c0_i32_74 : i32
    %281 = arith.extui %280 : i1 to i32
    %c0_i32_75 = arith.constant 0 : i32
    %282 = arith.cmpi ne, %281, %c0_i32_75 : i32
    scf.if %282 {
      %c0_76 = arith.constant 0 : index
      %c0_77 = arith.constant 0 : index
      %283 = vector.load %arg4[%c0_76, %c0_77] : memref<8x128xf32, #tpu.memory_space<vmem>>, vector<8x128xf32>
      tpu.vector_store %arg4[%c0_76, %c0_77], %271 {strides = array<i32>} : memref<8x128xf32, #tpu.memory_space<vmem>>, vector<8x128xf32>,
    } else {
    }
    return
  }
  func.func @transform_0(%arg0: i32) -> (i32, i32, i32) {
    %c0_i32 = arith.constant 0 : i32
    %c0_i32_0 = arith.constant 0 : i32
    %c0_i32_1 = arith.constant 0 : i32
    return %arg0, %c0_i32, %c0_i32_0 : i32, i32, i32
  }
  func.func @transform_1(%arg0: i32) -> (i32, i32) {
    %c0_i32 = arith.constant 0 : i32
    %c0_i32_0 = arith.constant 0 : i32
    %c0_i32_1 = arith.constant 0 : i32
    return %c0_i32, %c0_i32_0 : i32, i32
  }
  func.func @transform_2(%arg0: i32) -> (i32, i32, i32) {
    %c0_i32 = arith.constant 0 : i32
    %c0_i32_0 = arith.constant 0 : i32
    %c0_i32_1 = arith.constant 0 : i32
    return %arg0, %c0_i32, %c0_i32_0 : i32, i32, i32
  }
  func.func @transform_3(%arg0: i32) -> (i32, i32) {
    %c0_i32 = arith.constant 0 : i32
    %c0_i32_0 = arith.constant 0 : i32
    %c0_i32_1 = arith.constant 0 : i32
    return %c0_i32, %c0_i32_0 : i32, i32
  }
}

</mosaic_0001>

<bundles_post_ra>
// kernel: tpu_custom_call.1
= control target key start
LH: loop header
LB: loop body
LE: loop exit
PB: predicated region body
PF: predicated region fallthrough
CT: control target
= control target key end

     0   :  { %9 = vsyncpa [#allocation5], 0  ;;  %s2557_s0 = inlined_call_operand.hbm [shape: f32[8,8,512], index: 0, kind: input, shape index: {}]   ;;  %s2558_s1 = inlined_call_operand.hbm [shape: f32[128,512], index: 1, kind: input, shape index: {}]   ;;  %s2559_s2 = inlined_call_operand.hbm [shape: f32[8,8,128], index: 2, kind: output, shape index: {0}]   ;;  %s2560_s3 = inlined_call_operand.hbm [shape: f32[8,128], index: 3, kind: output, shape index: {1}]  }
   0x1   :  { %10 = vsyncpa [#allocation8], 0 }
   0x2   :  { %11 = vsyncpa [#allocation6], 0 }
   0x3   :  { %12 = vsyncpa [#allocation11], 0  ;;  %s17_s14 = sshll.u32 %s2557_s0, 4  ;;  %s1720_s15 = smov [#allocation4]   ;;  %s18_s14 = int_to_ptr.hbm [resolvable:$true] %s17_s14 }
   0x4   :  { %s19_s16 = sshll.u32 %s1720_s15, 4  ;;  %s30_s19 = sshll.u32 %s2558_s1, 4  ;;  %s20_s16 = int_to_ptr.vmem [resolvable:$true] %s19_s16  ;;  %s31_s19 = int_to_ptr.hbm [resolvable:$true] %s30_s19 }
   0x5   :  { %s1721_s20 = smov 512   ;;  %s1722_s21 = smov 32  }
   0x6   :  { %25 = dma.hbm_to_vmem [thread:$0]  %s18_s14, 4096, %s20_s16, [#allocation5], %s1721_s20, %s1721_s20, %s1722_s21  }
   0x7   :  { %s1723_s22 = smov [#allocation7]  }
   0x8   :  { %s32_s23 = sshll.u32 %s1723_s22, 4  ;;  %s33_s23 = int_to_ptr.vmem [resolvable:$true] %s32_s23 }
   0x9   :  { %38 = dma.hbm_to_vmem [thread:$0]  %s31_s19, 8192, %s33_s23, [#allocation8], %s1721_s20, %s1721_s20, %s1722_s21  }
   0xa   :  { %1712 = dma.done.wait [#allocation5], 4096  }
   0xb   :  { %1713 = vsyncadd [#allocation5], 4294963200 }
   0xc   :  { %1714 = dma.done.wait [#allocation8], 8192  }
   0xd   :  { %1715 = vsyncadd [#allocation8], 4294959104  ;;  %v1755_v0 = vld [vmem:[#allocation7 + $0x1e0] sm:$0xff]  ;;  %v1757_v1 = vld [vmem:[#allocation7 + $0x1e8] sm:$0xff]  ;;  %v1724_v60 = vmov 0.0   ;;  %s1725_s0 = smov [#allocation10]  }
   0xe   :  { %2667 = vst [vmem:[#allocation16_spill] sm:$0xff] %v1755_v0  ;;  %v1759_v2 = vld [vmem:[#allocation7 + $0x1f8] sm:$0xff]  ;;  %123 = vmatpush.msra.mxu0 %v1755_v0  ;;  %143 = vmatpush.msra.mxu1 %v1757_v1  ;;  %v1763_v3 = vld [vmem:[#allocation7 + $0x1c0] sm:$0xff]  ;;  %v1765_v4 = vld [vmem:[#allocation7 + $0x1c8] sm:$0xff]  ;;  %s1373_s1 = sshll.u32 %s1725_s0, 4  ;;  %s1375_s26 = sshll.u32 %s2560_s3, 4  ;;  %s1374_s1 = int_to_ptr.vmem [resolvable:$true] %s1373_s1  ;;  %s1376_s26 = int_to_ptr.hbm [resolvable:$true] %s1375_s26 }
   0xf   :  { %v1767_v5 = vld [vmem:[#allocation7 + $0x1d8] sm:$0xff]  ;;  %183 = vmatpush.msra.mxu3 %v1759_v2  ;;  %v1770_v6 = vld [vmem:[#allocation7 + $0x1a0] sm:$0xff]  ;;  %v1772_v7 = vld [vmem:[#allocation7 + $0x1a8] sm:$0xff]  ;;  %s1726_s27 = smov [#allocation9]   ;;  %s1361_s30 = sshll.u32 %s2559_s2, 4  ;;  %s1362_s30 = int_to_ptr.hbm [resolvable:$true] %s1361_s30 }
  0x10   :  { %124 = vmatpush.msra.mxu0 %v1763_v3  ;;  %144 = vmatpush.msra.mxu1 %v1765_v4  ;;  %v1776_v8 = vld [vmem:[#allocation7 + $0x1b8] sm:$0xff]  ;;  %v1779_v9 = vld [vmem:[#allocation7 + $0x180] sm:$0xff]  ;;  %v1781_v10 = vld [vmem:[#allocation7 + $0x188] sm:$0xff]  ;;  %s1359_s28 = sshll.u32 %s1726_s27, 4  ;;  %s1727_s4 = smov 128   ;;  %s1360_s28 = int_to_ptr.vmem [resolvable:$true] %s1359_s28 }
  0x11   :  { %184 = vmatpush.msra.mxu3 %v1767_v5  ;;  %v1785_v11 = vld [vmem:[#allocation7 + $0x198] sm:$0xff]  ;;  %v1788_v12 = vld [vmem:[#allocation7 + $0x160] sm:$0xff]  ;;  %v1790_v13 = vld [vmem:[#allocation7 + $0x168] sm:$0xff]  ;;  %s1728_s5 = smov 8  }
  0x12   :  { %125 = vmatpush.msra.mxu0 %v1770_v6  ;;  %145 = vmatpush.msra.mxu1 %v1772_v7  ;;  %v1794_v14 = vld [vmem:[#allocation7 + $0x178] sm:$0xff]  ;;  %v1797_v15 = vld [vmem:[#allocation7 + $0x140] sm:$0xff]  ;;  %v1799_v16 = vld [vmem:[#allocation7 + $0x148] sm:$0xff] }
  0x13   :  { %185 = vmatpush.msra.mxu3 %v1776_v8  ;;  %v1801_v17 = vld [vmem:[#allocation7 + $0x1f0] sm:$0xff]  ;;  %v1805_v18 = vld [vmem:[#allocation7 + $0x158] sm:$0xff]  ;;  %v1810_v20 = vld [vmem:[#allocation7 + $0x120] sm:$0xff] }
  0x14   :  { %126 = vmatpush.msra.mxu0 %v1779_v9  ;;  %146 = vmatpush.msra.mxu1 %v1781_v10  ;;  %v1807_v19 = vld [vmem:[#allocation7 + $0x1d0] sm:$0xff]  ;;  %v1812_v21 = vld [vmem:[#allocation7 + $0x128] sm:$0xff]  ;;  %v1817_v22 = vld [vmem:[#allocation7 + $0x138] sm:$0xff] }
  0x15   :  { %186 = vmatpush.msra.mxu3 %v1785_v11  ;;  %163 = vmatpush.msra.mxu2 %v1801_v17  ;;  %v1819_v23 = vld [vmem:[#allocation7 + $0x1b0] sm:$0xff]  ;;  %v1822_v24 = vld [vmem:[#allocation7 + $0x100] sm:$0xff]  ;;  %v1824_v25 = vld [vmem:[#allocation7 + $0x108] sm:$0xff] }
  0x16   :  { %127 = vmatpush.msra.mxu0 %v1788_v12  ;;  %147 = vmatpush.msra.mxu1 %v1790_v13  ;;  %v1829_v26 = vld [vmem:[#allocation7 + $0x118] sm:$0xff]  ;;  %v1831_v27 = vld [vmem:[#allocation7 + $0x190] sm:$0xff]  ;;  %v1834_v28 = vld [vmem:[#allocation7 + $0xe0] sm:$0xff] }
  0x17   :  { %187 = vmatpush.msra.mxu3 %v1794_v14  ;;  %164 = vmatpush.msra.mxu2 %v1807_v19  ;;  %v1836_v29 = vld [vmem:[#allocation7 + $0xe8] sm:$0xff]  ;;  %v1841_v30 = vld [vmem:[#allocation7 + $0xf8] sm:$0xff]  ;;  %v1843_v31 = vld [vmem:[#allocation7 + $0x170] sm:$0xff] }
  0x18   :  { %128 = vmatpush.msra.mxu0 %v1797_v15  ;;  %148 = vmatpush.msra.mxu1 %v1799_v16  ;;  %v1846_v32 = vld [vmem:[#allocation7 + $0xc0] sm:$0xff]  ;;  %v1848_v33 = vld [vmem:[#allocation7 + $0xc8] sm:$0xff]  ;;  %v1853_v34 = vld [vmem:[#allocation7 + $0xd8] sm:$0xff] }
  0x19   :  { %188 = vmatpush.msra.mxu3 %v1805_v18  ;;  %165 = vmatpush.msra.mxu2 %v1819_v23  ;;  %2668 = vst [vmem:[#allocation17_spill] sm:$0xff] %v1853_v34  ;;  %v1855_v35 = vld [vmem:[#allocation7 + $0x150] sm:$0xff]  ;;  %v1858_v36 = vld [vmem:[#allocation7 + $0xa0] sm:$0xff]  ;;  %v1860_v37 = vld [vmem:[#allocation7 + $0xa8] sm:$0xff] }
  0x1a   :  { %129 = vmatpush.msra.mxu0 %v1810_v20  ;;  %149 = vmatpush.msra.mxu1 %v1812_v21  ;;  %2669 = vst [vmem:[#allocation18_spill] sm:$0xff] %v1858_v36  ;;  %v1865_v38 = vld [vmem:[#allocation7 + $0xb8] sm:$0xff]  ;;  %v1867_v39 = vld [vmem:[#allocation7 + $0x130] sm:$0xff]  ;;  %v1870_v40 = vld [vmem:[#allocation7 + $0x80] sm:$0xff] }
  0x1b   :  { %189 = vmatpush.msra.mxu3 %v1817_v22  ;;  %166 = vmatpush.msra.mxu2 %v1831_v27  ;;  %2670 = vst [vmem:[#allocation19_spill] sm:$0xff] %v1860_v37  ;;  %v1872_v41 = vld [vmem:[#allocation7 + $0x88] sm:$0xff]  ;;  %v1877_v42 = vld [vmem:[#allocation7 + $0x98] sm:$0xff]  ;;  %v1879_v43 = vld [vmem:[#allocation7 + $0x110] sm:$0xff] }
  0x1c   :  { %130 = vmatpush.msra.mxu0 %v1822_v24  ;;  %150 = vmatpush.msra.mxu1 %v1824_v25  ;;  %2671 = vst [vmem:[#allocation20_spill] sm:$0xff] %v1865_v38  ;;  %v1882_v44 = vld [vmem:[#allocation7 + $0x60] sm:$0xff]  ;;  %v1884_v45 = vld [vmem:[#allocation7 + $0x68] sm:$0xff]  ;;  %v1889_v46 = vld [vmem:[#allocation7 + $0x78] sm:$0xff] }
  0x1d   :  { %190 = vmatpush.msra.mxu3 %v1829_v26  ;;  %167 = vmatpush.msra.mxu2 %v1843_v31  ;;  %2672 = vst [vmem:[#allocation21_spill] sm:$0xff] %v1870_v40  ;;  %v1891_v47 = vld [vmem:[#allocation7 + $0xf0] sm:$0xff]  ;;  %v1894_v48 = vld [vmem:[#allocation7 + $0x40] sm:$0xff]  ;;  %v1896_v49 = vld [vmem:[#allocation7 + $0x48] sm:$0xff] }
  0x1e   :  { %131 = vmatpush.msra.mxu0 %v1834_v28  ;;  %151 = vmatpush.msra.mxu1 %v1836_v29  ;;  %2673 = vst [vmem:[#allocation22_spill] sm:$0xff] %v1872_v41  ;;  %v1901_v50 = vld [vmem:[#allocation7 + $0x58] sm:$0xff]  ;;  %v1903_v51 = vld [vmem:[#allocation7 + $0xd0] sm:$0xff]  ;;  %v1906_v52 = vld [vmem:[#allocation7 + $0x20] sm:$0xff] }
  0x1f   :  { %191 = vmatpush.msra.mxu3 %v1841_v30  ;;  %168 = vmatpush.msra.mxu2 %v1855_v35  ;;  %2674 = vst [vmem:[#allocation23_spill] sm:$0xff] %v1877_v42  ;;  %v1908_v53 = vld [vmem:[#allocation7 + $0x28] sm:$0xff]  ;;  %v1913_v54 = vld [vmem:[#allocation7 + $0x38] sm:$0xff]  ;;  %v1915_v55 = vld [vmem:[#allocation7 + $0xb0] sm:$0xff] }
  0x20   :  { %132 = vmatpush.msra.mxu0 %v1846_v32  ;;  %152 = vmatpush.msra.mxu1 %v1848_v33  ;;  %2675 = vst [vmem:[#allocation24_spill] sm:$0xff] %v1882_v44  ;;  %v1918_v56 = vld [vmem:[#allocation7] sm:$0xff]  ;;  %v1920_v57 = vld [vmem:[#allocation7 + $0x8] sm:$0xff]  ;;  %v1925_v58 = vld [vmem:[#allocation7 + $0x18] sm:$0xff] }
  0x21   :  { %192 = vmatpush.msra.mxu3 %v1853_v34  ;;  %2676 = vst [vmem:[#allocation25_spill] sm:$0xff] %v1884_v45  ;;  %169 = vmatpush.msra.mxu2 %v1867_v39  ;;  %v1931_v59 = vld [vmem:[#allocation7 + $0x90] sm:$0xff] }
  0x22   :  { %133 = vmatpush.msra.mxu0 %v1858_v36  ;;  %153 = vmatpush.msra.mxu1 %v1860_v37  ;;  %2677 = vst [vmem:[#allocation26_spill] sm:$0xff] %v1889_v46  ;;  %v1934_v61 = vld [vmem:[#allocation7 + $0x70] sm:$0xff] }
  0x23   :  { %193 = vmatpush.msra.mxu3 %v1865_v38  ;;  %2678 = vst [vmem:[#allocation27_spill] sm:$0xff] %v1894_v48  ;;  %170 = vmatpush.msra.mxu2 %v1879_v43  ;;  %v1938_v62 = vld [vmem:[#allocation7 + $0x50] sm:$0xff] }
  0x24   :  { %134 = vmatpush.msra.mxu0 %v1870_v40  ;;  %154 = vmatpush.msra.mxu1 %v1872_v41  ;;  %2679 = vst [vmem:[#allocation28_spill] sm:$0xff] %v1896_v49  ;;  %v1944_v63 = vld [vmem:[#allocation7 + $0x30] sm:$0xff] }
  0x25   :  { %194 = vmatpush.msra.mxu3 %v1877_v42  ;;  %2680 = vst [vmem:[#allocation29_spill] sm:$0xff] %v1901_v50  ;;  %171 = vmatpush.msra.mxu2 %v1891_v47 }
  0x26   :  { %135 = vmatpush.msra.mxu0 %v1882_v44  ;;  %155 = vmatpush.msra.mxu1 %v1884_v45  ;;  %2681 = vst [vmem:[#allocation30_spill] sm:$0xff] %v1903_v51 }
  0x27   :  { %195 = vmatpush.msra.mxu3 %v1889_v46  ;;  %2682 = vst [vmem:[#allocation31_spill] sm:$0xff] %v1906_v52  ;;  %172 = vmatpush.msra.mxu2 %v1903_v51 }
  0x28   :  { %2683 = vst [vmem:[#allocation32_spill] sm:$0xff] %v1908_v53  ;;  %136 = vmatpush.msra.mxu0 %v1894_v48  ;;  %156 = vmatpush.msra.mxu1 %v1896_v49 }
  0x29   :  { %2684 = vst [vmem:[#allocation33_spill] sm:$0xff] %v1913_v54  ;;  %196 = vmatpush.msra.mxu3 %v1901_v50  ;;  %173 = vmatpush.msra.mxu2 %v1915_v55 }
  0x2a   :  { %2685 = vst [vmem:[#allocation34_spill] sm:$0xff] %v1915_v55  ;;  %137 = vmatpush.msra.mxu0 %v1906_v52  ;;  %157 = vmatpush.msra.mxu1 %v1908_v53 }
  0x2b   :  { %2686 = vst [vmem:[#allocation35_spill] sm:$0xff] %v1918_v56  ;;  %197 = vmatpush.msra.mxu3 %v1913_v54  ;;  %174 = vmatpush.msra.mxu2 %v1931_v59 }
  0x2c   :  { %2687 = vst [vmem:[#allocation36_spill] sm:$0xff] %v1920_v57  ;;  %138 = vmatpush.msra.mxu0 %v1918_v56  ;;  %158 = vmatpush.msra.mxu1 %v1920_v57 }
  0x2d   :  { %2688 = vst [vmem:[#allocation37_spill] sm:$0xff] %v1925_v58  ;;  %198 = vmatpush.msra.mxu3 %v1925_v58  ;;  %139 = vmatmul.f32.vlgmr.msra.gmra.mxu0 %v1724_v60 }
  0x2e   :  { %2689 = vst [vmem:[#allocation38_spill] sm:$0xff] %v1931_v59  ;;  %159 = vmatmul.f32.vlgmr.msra.gmra.mxu1 %v1724_v60  ;;  %199 = vmatmul.f32.vlgmr.msra.gmra.mxu3 %v1724_v60 }
  0x2f   :  { %2690 = vst [vmem:[#allocation39_spill] sm:$0xff] %v1934_v61  ;;  %276 = vmatpush.msrb.mxu0 %v1755_v0  ;;  %296 = vmatpush.msrb.mxu1 %v1757_v1  ;;  %v1950_v0 = vld [vmem:[#allocation7 + $0x10] sm:$0xff] }
  0x30   :  { %2691 = vst [vmem:[#allocation40_spill] sm:$0xff] %v1938_v62  ;;  %336 = vmatpush.msrb.mxu3 %v1759_v2  ;;  %175 = vmatpush.msra.mxu2 %v1934_v61 }
  0x31   :  { %277 = vmatpush.msrb.mxu0 %v1763_v3  ;;  %2692 = vst [vmem:[#allocation41_spill] sm:$0xff] %v1944_v63  ;;  %297 = vmatpush.msrb.mxu1 %v1765_v4 }
  0x32   :  { %337 = vmatpush.msrb.mxu3 %v1767_v5  ;;  %176 = vmatpush.msra.mxu2 %v1938_v62  ;;  %2693 = vst [vmem:[#allocation42_spill] sm:$0xff] %v1950_v0 }
  0x33   :  { %278 = vmatpush.msrb.mxu0 %v1770_v6  ;;  %298 = vmatpush.msrb.mxu1 %v1772_v7 }
  0x34   :  { %338 = vmatpush.msrb.mxu3 %v1776_v8  ;;  %177 = vmatpush.msra.mxu2 %v1944_v63 }
  0x35   :  { %279 = vmatpush.msrb.mxu0 %v1779_v9  ;;  %299 = vmatpush.msrb.mxu1 %v1781_v10 }
  0x36   :  { %339 = vmatpush.msrb.mxu3 %v1785_v11  ;;  %178 = vmatpush.msra.mxu2 %v1950_v0 }
  0x37   :  { %280 = vmatpush.msrb.mxu0 %v1788_v12  ;;  %179 = vmatmul.f32.vlgmr.msra.gmra.mxu2 %v1724_v60  ;;  %v2694_v60 = vld [vmem:[#allocation16_spill] sm:$0xff] }
  0x38   :  { %300 = vmatpush.msrb.mxu1 %v1790_v13  ;;  %316 = vmatpush.msrb.mxu2 %v1801_v17 }
  0x39   :  { %340 = vmatpush.msrb.mxu3 %v1794_v14  ;;  %281 = vmatpush.msrb.mxu0 %v1797_v15 }
  0x3a   :  { %301 = vmatpush.msrb.mxu1 %v1799_v16  ;;  %317 = vmatpush.msrb.mxu2 %v1807_v19 }
  0x3b   :  { %341 = vmatpush.msrb.mxu3 %v1805_v18  ;;  %282 = vmatpush.msrb.mxu0 %v1810_v20 }
  0x3c   :  { %302 = vmatpush.msrb.mxu1 %v1812_v21  ;;  %318 = vmatpush.msrb.mxu2 %v1819_v23 }
  0x3d   :  { %342 = vmatpush.msrb.mxu3 %v1817_v22  ;;  %283 = vmatpush.msrb.mxu0 %v1822_v24 }
  0x3e   :  { %303 = vmatpush.msrb.mxu1 %v1824_v25  ;;  %319 = vmatpush.msrb.mxu2 %v1831_v27 }
  0x3f   :  { %343 = vmatpush.msrb.mxu3 %v1829_v26  ;;  %284 = vmatpush.msrb.mxu0 %v1834_v28 }
  0x40   :  { %304 = vmatpush.msrb.mxu1 %v1836_v29  ;;  %320 = vmatpush.msrb.mxu2 %v1843_v31 }
  0x41   :  { %344 = vmatpush.msrb.mxu3 %v1841_v30  ;;  %285 = vmatpush.msrb.mxu0 %v1846_v32 }
  0x42   :  { %305 = vmatpush.msrb.mxu1 %v1848_v33  ;;  %321 = vmatpush.msrb.mxu2 %v1855_v35 }
  0x43   :  { %345 = vmatpush.msrb.mxu3 %v1853_v34  ;;  %286 = vmatpush.msrb.mxu0 %v1858_v36 }
  0x44   :  { %306 = vmatpush.msrb.mxu1 %v1860_v37  ;;  %322 = vmatpush.msrb.mxu2 %v1867_v39 }
  0x45   :  { %346 = vmatpush.msrb.mxu3 %v1865_v38  ;;  %287 = vmatpush.msrb.mxu0 %v1870_v40 }
  0x46   :  { %307 = vmatpush.msrb.mxu1 %v1872_v41  ;;  %323 = vmatpush.msrb.mxu2 %v1879_v43 }
  0x47   :  { %347 = vmatpush.msrb.mxu3 %v1877_v42  ;;  %288 = vmatpush.msrb.mxu0 %v1882_v44 }
  0x48   :  { %308 = vmatpush.msrb.mxu1 %v1884_v45  ;;  %324 = vmatpush.msrb.mxu2 %v1891_v47 }
  0x49   :  { %348 = vmatpush.msrb.mxu3 %v1889_v46  ;;  %289 = vmatpush.msrb.mxu0 %v1894_v48 }
  0x4a   :  { %309 = vmatpush.msrb.mxu1 %v1896_v49  ;;  %325 = vmatpush.msrb.mxu2 %v1903_v51 }
  0x4b   :  { %349 = vmatpush.msrb.mxu3 %v1901_v50  ;;  %290 = vmatpush.msrb.mxu0 %v1906_v52 }
  0x4c   :  { %310 = vmatpush.msrb.mxu1 %v1908_v53  ;;  %326 = vmatpush.msrb.mxu2 %v1915_v55 }
  0x4d   :  { %350 = vmatpush.msrb.mxu3 %v1913_v54  ;;  %291 = vmatpush.msrb.mxu0 %v1918_v56 }
  0x4e   :  { %311 = vmatpush.msrb.mxu1 %v1920_v57  ;;  %327 = vmatpush.msrb.mxu2 %v1931_v59 }
  0x4f   :  { %351 = vmatpush.msrb.mxu3 %v1925_v58  ;;  %430 = vmatpush.msra.mxu0 %v2694_v60 }
  0x50   :  { %450 = vmatpush.msra.mxu1 %v1757_v1  ;;  %328 = vmatpush.msrb.mxu2 %v1934_v61 }
  0x51   :  { %490 = vmatpush.msra.mxu3 %v1759_v2  ;;  %431 = vmatpush.msra.mxu0 %v1763_v3 }
  0x52   :  { %451 = vmatpush.msra.mxu1 %v1765_v4  ;;  %329 = vmatpush.msrb.mxu2 %v1938_v62 }
  0x53   :  { %491 = vmatpush.msra.mxu3 %v1767_v5  ;;  %432 = vmatpush.msra.mxu0 %v1770_v6 }
  0x54   :  { %452 = vmatpush.msra.mxu1 %v1772_v7  ;;  %330 = vmatpush.msrb.mxu2 %v1944_v63 }
  0x55   :  { %492 = vmatpush.msra.mxu3 %v1776_v8  ;;  %433 = vmatpush.msra.mxu0 %v1779_v9 }
  0x56   :  { %453 = vmatpush.msra.mxu1 %v1781_v10  ;;  %331 = vmatpush.msrb.mxu2 %v1950_v0 }
  0x57   :  { %493 = vmatpush.msra.mxu3 %v1785_v11  ;;  %434 = vmatpush.msra.mxu0 %v1788_v12 }
  0x58   :  { %470 = vmatpush.msra.mxu2 %v1801_v17  ;;  %454 = vmatpush.msra.mxu1 %v1790_v13 }
  0x59   :  { %494 = vmatpush.msra.mxu3 %v1794_v14  ;;  %435 = vmatpush.msra.mxu0 %v1797_v15 }
  0x5a   :  { %471 = vmatpush.msra.mxu2 %v1807_v19  ;;  %455 = vmatpush.msra.mxu1 %v1799_v16 }
  0x5b   :  { %495 = vmatpush.msra.mxu3 %v1805_v18  ;;  %436 = vmatpush.msra.mxu0 %v1810_v20 }
  0x5c   :  { %472 = vmatpush.msra.mxu2 %v1819_v23  ;;  %456 = vmatpush.msra.mxu1 %v1812_v21 }
  0x5d   :  { %496 = vmatpush.msra.mxu3 %v1817_v22  ;;  %437 = vmatpush.msra.mxu0 %v1822_v24 }
  0x5e   :  { %473 = vmatpush.msra.mxu2 %v1831_v27  ;;  %457 = vmatpush.msra.mxu1 %v1824_v25 }
  0x5f   :  { %497 = vmatpush.msra.mxu3 %v1829_v26  ;;  %438 = vmatpush.msra.mxu0 %v1834_v28 }
  0x60   :  { %474 = vmatpush.msra.mxu2 %v1843_v31  ;;  %458 = vmatpush.msra.mxu1 %v1836_v29 }
  0x61   :  { %498 = vmatpush.msra.mxu3 %v1841_v30  ;;  %439 = vmatpush.msra.mxu0 %v1846_v32 }
  0x62   :  { %475 = vmatpush.msra.mxu2 %v1855_v35  ;;  %459 = vmatpush.msra.mxu1 %v1848_v33 }
  0x63   :  { %499 = vmatpush.msra.mxu3 %v1853_v34  ;;  %440 = vmatpush.msra.mxu0 %v1858_v36 }
  0x64   :  { %476 = vmatpush.msra.mxu2 %v1867_v39  ;;  %460 = vmatpush.msra.mxu1 %v1860_v37 }
  0x65   :  { %500 = vmatpush.msra.mxu3 %v1865_v38  ;;  %441 = vmatpush.msra.mxu0 %v1870_v40 }
  0x66   :  { %477 = vmatpush.msra.mxu2 %v1879_v43  ;;  %461 = vmatpush.msra.mxu1 %v1872_v41 }
  0x67   :  { %501 = vmatpush.msra.mxu3 %v1877_v42  ;;  %442 = vmatpush.msra.mxu0 %v1882_v44 }
  0x68   :  { %478 = vmatpush.msra.mxu2 %v1891_v47  ;;  %462 = vmatpush.msra.mxu1 %v1884_v45 }
  0x69   :  { %502 = vmatpush.msra.mxu3 %v1889_v46  ;;  %443 = vmatpush.msra.mxu0 %v1894_v48 }
  0x6a   :  { %479 = vmatpush.msra.mxu2 %v1903_v51  ;;  %463 = vmatpush.msra.mxu1 %v1896_v49 }
  0x6b   :  { %503 = vmatpush.msra.mxu3 %v1901_v50  ;;  %444 = vmatpush.msra.mxu0 %v1906_v52  ;;  %v119_v52 = vld [vmem:[#allocation4] sm:$0xff] }
  0x6c   :  { %480 = vmatpush.msra.mxu2 %v1915_v55  ;;  %464 = vmatpush.msra.mxu1 %v1908_v53  ;;  %v120_v53 = vld [vmem:[#allocation4 + $0x8] sm:$0xff] }
  0x6d   :  { %504 = vmatpush.msra.mxu3 %v1913_v54  ;;  %445 = vmatpush.msra.mxu0 %v1918_v56 }
  0x6e   :  { %481 = vmatpush.msra.mxu2 %v1931_v59  ;;  %465 = vmatpush.msra.mxu1 %v1920_v57  ;;  %v122_v57 = vld [vmem:[#allocation4 + $0x18] sm:$0xff] }
  0x6f   :  { %505 = vmatpush.msra.mxu3 %v1925_v58 }
  0x70   :  { %482 = vmatpush.msra.mxu2 %v1934_v61 }
  0x72   :  { %483 = vmatpush.msra.mxu2 %v1938_v62 }
  0x74   :  { %484 = vmatpush.msra.mxu2 %v1944_v63 }
  0x76   :  { %485 = vmatpush.msra.mxu2 %v1950_v0  ;;  %v121_v0 = vld [vmem:[#allocation4 + $0x10] sm:$0xff] }
  0xaa   :  { %v140_v50 = vpop.f32.mrf.mxu0 }
  0xab   :  { %v203_v54 = vadd.f32 %v140_v50, %v119_v52  ;;  %v160_v49 = vpop.f32.mrf.mxu1 }
  0xac   :  { %v204_v48 = vadd.f32 %v160_v49, %v120_v53 }
  0xad   :  { %v1391_v46 = vmul.f32 -1.442695, %v203_v54 }
  0xae   :  { %v1392_v56 = vmul.f32 -1.442695, %v204_v48 }
  0xaf   :  { %1424 = vpow2.f32 %v1391_v46 }
  0xb0   :  { %1426 = vpow2.f32 %v1392_v56 }
  0xb1   :  { %v200_v58 = vpop.f32.mrf.mxu3 }
  0xb2   :  { %v206_v45 = vadd.f32 %v200_v58, %v122_v57 }
  0xb4   :  { %v1393_v61 = vmul.f32 -1.442695, %v206_v45 }
  0xb5   :  { %v1425_v44 = vpop.eup %1424 }
  0xb6   :  { %v1427_v62 = vpop.eup %1426  ;;  %v210_v42 = vadd.f32 1.0, %v1425_v44  ;;  %1428 = vpow2.f32 %v1393_v61 }
  0xb7   :  { %v229_v63 = vadd.f32 1.0, %v1427_v62 }
  0xb8   :  { %1430 = vrcp.f32 %v210_v42  ;;  %v222_v57 = vand.u32 2147483648, %v210_v42  ;;  %v220_v61 = vand.u32 2147483647, %v210_v42  ;;  %vm216_vm2 = vweird.f32 %v210_v42 }
  0xb9   :  { %1432 = vrcp.f32 %v229_v63  ;;  %v241_v58 = vand.u32 2147483648, %v229_v63  ;;  %v239_v41 = vand.u32 2147483647, %v229_v63  ;;  %vm235_vm3 = vweird.f32 %v229_v63 }
  0xba   :  { %v180_v59 = vpop.f32.mrf.mxu2  ;;  %vm221_vm5 = vcmp.eq.f32.partialorder %v220_v61, 8.507059e+37  ;;  %v2702_v61 = vld [vmem:[#allocation22_spill] sm:$0xff] }
  0xbb   :  { %v205_v52 = vadd.f32 %v180_v59, %v121_v0  ;;  %vm240_vm7 = vcmp.eq.f32.partialorder %v239_v41, 8.507059e+37 }
  0xbc   :  { %v1429_v50 = vpop.eup %1428 }
  0xbd   :  { %v249_v49 = vadd.f32 1.0, %v1429_v50  ;;  %v223_v50 = vor.u32 1.1754944e-38, %v222_v57 }
  0xbe   :  { %v1431_v53 = vpop.eup %1430 }
  0xbf   :  { %v1433_v48 = vpop.eup %1432  ;;  %v212_v46 = vmul.f32 %v1431_v53, %v210_v42  ;;  %1434 = vrcp.f32 %v249_v49  ;;  %vm217_vm0 = vweird.f32 %v1431_v53  ;;  %vm255_vm9 = vweird.f32 %v249_v49 }
  0xc0   :  { %v231_v54 = vmul.f32 %v1433_v48, %v229_v63  ;;  %1436 = vtanh.f32 %v205_v52  ;;  %vm236_vm1 = vweird.f32 %v1433_v48  ;;  %vm218_vm4 = vmor %vm216_vm2, %vm217_vm0  ;;  %v242_v52 = vor.u32 1.1754944e-38, %v241_v58 }
  0xc1   :  { %v213_v56 = vsub.f32 1.0, %v212_v46  ;;  %vm237_vm6 = vmor %vm235_vm3, %vm236_vm1  ;;  %v261_v63 = vand.u32 2147483648, %v249_v49  ;;  %v259_v57 = vand.u32 2147483647, %v249_v49 }
  0xc2   :  { %v232_v45 = vsub.f32 1.0, %v231_v54 }
  0xc3   :  { %v214_v44 = vmul.f32 %v1431_v53, %v213_v56  ;;  %vm260_vm11 = vcmp.eq.f32.partialorder %v259_v57, 8.507059e+37  ;;  %v2714_v57 = vld [vmem:[#allocation32_spill] sm:$0xff] }
  0xc4   :  { %v233_v62 = vmul.f32 %v1433_v48, %v232_v45 }
  0xc5   :  { %v1435_v40 = vpop.eup %1434  ;;  %v215_v38 = vadd.f32 %v1431_v53, %v214_v44 }
  0xc6   :  { %v1437_v0 = vpop.eup %1436  ;;  %v251_v59 = vmul.f32 %v1435_v40, %v249_v49  ;;  %v234_v55 = vadd.f32 %v1433_v48, %v233_v62  ;;  %vm256_vm8 = vweird.f32 %v1435_v40  ;;  %v2700_v49 = vld [vmem:[#allocation20_spill] sm:$0xff]  ;;  %v2703_v62 = vld [vmem:[#allocation38_spill] sm:$0xff] }
  0xc7   :  { %v219_v46 = vsel %vm218_vm4, %v1431_v53, %v215_v38  ;;  %vm257_vm10 = vmor %vm255_vm9, %vm256_vm8  ;;  %v262_v53 = vor.u32 1.1754944e-38, %v261_v63  ;;  %v2713_v63 = vld [vmem:[#allocation31_spill] sm:$0xff] }
  0xc8   :  { %v252_v54 = vsub.f32 1.0, %v251_v59  ;;  %v224_v56 = vsel %vm221_vm5, %v223_v50, %v219_v46  ;;  %v238_v37 = vsel %vm237_vm6, %v1433_v48, %v234_v55  ;;  %v2701_v48 = vld [vmem:[#allocation21_spill] sm:$0xff]  ;;  %v2705_v59 = vld [vmem:[#allocation24_spill] sm:$0xff]  ;;  %v2708_v46 = vld [vmem:[#allocation26_spill] sm:$0xff] }
  0xc9   :  { %v243_v45 = vsel %vm240_vm7, %v242_v52, %v238_v37  ;;  %v266_v36 = vmul.f32 %v1437_v0, %v224_v56  ;;  %v2697_v37 = vld [vmem:[#allocation18_spill] sm:$0xff]  ;;  %v2704_v0 = vld [vmem:[#allocation23_spill] sm:$0xff]  ;;  %v2706_v50 = vld [vmem:[#allocation25_spill] sm:$0xff] }
  0xca   :  { %v253_v34 = vmul.f32 %v1435_v40, %v252_v54  ;;  %v265_v51 = vmul.f32 0.0, %v243_v45  ;;  %v2707_v52 = vld [vmem:[#allocation39_spill] sm:$0xff]  ;;  %v2710_v56 = vld [vmem:[#allocation28_spill] sm:$0xff] }
  0xcb   :  { %v2709_v54 = vld [vmem:[#allocation27_spill] sm:$0xff]  ;;  %v2711_v45 = vld [vmem:[#allocation40_spill] sm:$0xff] }
  0xcc   :  { %v2075_v44 = vadd.f32 %v266_v36, %v265_v51  ;;  %v254_v42 = vadd.f32 %v1435_v40, %v253_v34  ;;  %v2695_v34 = vld [vmem:[#allocation30_spill] sm:$0xff]  ;;  %v2696_v36 = vld [vmem:[#allocation17_spill] sm:$0xff] }
  0xcd   :  { %v2699_v51 = vld [vmem:[#allocation34_spill] sm:$0xff] }
  0xce   :  { %1438 = vtanh.f32 %v2075_v44  ;;  %v258_v38 = vsel %vm257_vm10, %v1435_v40, %v254_v42  ;;  %v2698_v40 = vld [vmem:[#allocation19_spill] sm:$0xff]  ;;  %v2712_v42 = vld [vmem:[#allocation29_spill] sm:$0xff] }
  0xcf   :  { %v263_v55 = vsel %vm260_vm11, %v262_v53, %v258_v38  ;;  %v2715_v38 = vld [vmem:[#allocation41_spill] sm:$0xff] }
  0xd0   :  { %v2716_v53 = vld [vmem:[#allocation33_spill] sm:$0xff] }
  0xd4   :  { %v1439_v58 = vpop.eup %1438 }
  0xd5   :  { %v269_v41 = vmul.f32 %v1439_v58, %v263_v55  ;;  %v2717_v58 = vld [vmem:[#allocation35_spill] sm:$0xff]  ;;  %v2718_v55 = vld [vmem:[#allocation36_spill] sm:$0xff] }
  0xd7   :  { %270 = vst [vmem:[#allocation9] sm:$0xff] %v269_v41  ;;  %292 = vmatmul.f32.vlgmr.msrb.gmra.mxu0 %v269_v41  ;;  %312 = vmatmul.f32.vlgmr.msrb.gmra.mxu1 %v269_v41 }
  0xd8   :  { %332 = vmatmul.f32.vlgmr.msrb.gmra.mxu2 %v269_v41  ;;  %352 = vmatmul.f32.vlgmr.msrb.gmra.mxu3 %v269_v41  ;;  %v2719_v41 = vld [vmem:[#allocation42_spill] sm:$0xff] }
  0xd9   :  { %584 = vmatpush.msrb.mxu0 %v2694_v60  ;;  %604 = vmatpush.msrb.mxu1 %v1757_v1 }
  0xda   :  { %624 = vmatpush.msrb.mxu2 %v1801_v17  ;;  %644 = vmatpush.msrb.mxu3 %v1759_v2 }
  0xdb   :  { %585 = vmatpush.msrb.mxu0 %v1763_v3  ;;  %605 = vmatpush.msrb.mxu1 %v1765_v4 }
  0xdc   :  { %625 = vmatpush.msrb.mxu2 %v1807_v19  ;;  %645 = vmatpush.msrb.mxu3 %v1767_v5 }
  0xdd   :  { %586 = vmatpush.msrb.mxu0 %v1770_v6  ;;  %606 = vmatpush.msrb.mxu1 %v1772_v7 }
  0xde   :  { %626 = vmatpush.msrb.mxu2 %v1819_v23  ;;  %646 = vmatpush.msrb.mxu3 %v1776_v8 }
  0xdf   :  { %587 = vmatpush.msrb.mxu0 %v1779_v9  ;;  %607 = vmatpush.msrb.mxu1 %v1781_v10 }
  0xe0   :  { %627 = vmatpush.msrb.mxu2 %v1831_v27  ;;  %647 = vmatpush.msrb.mxu3 %v1785_v11 }
  0xe1   :  { %588 = vmatpush.msrb.mxu0 %v1788_v12  ;;  %608 = vmatpush.msrb.mxu1 %v1790_v13 }
  0xe2   :  { %628 = vmatpush.msrb.mxu2 %v1843_v31  ;;  %648 = vmatpush.msrb.mxu3 %v1794_v14 }
  0xe3   :  { %589 = vmatpush.msrb.mxu0 %v1797_v15  ;;  %609 = vmatpush.msrb.mxu1 %v1799_v16 }
  0xe4   :  { %629 = vmatpush.msrb.mxu2 %v1855_v35  ;;  %649 = vmatpush.msrb.mxu3 %v1805_v18 }
  0xe5   :  { %590 = vmatpush.msrb.mxu0 %v1810_v20  ;;  %610 = vmatpush.msrb.mxu1 %v1812_v21 }
  0xe6   :  { %630 = vmatpush.msrb.mxu2 %v1867_v39  ;;  %650 = vmatpush.msrb.mxu3 %v1817_v22 }
  0xe7   :  { %591 = vmatpush.msrb.mxu0 %v1822_v24  ;;  %611 = vmatpush.msrb.mxu1 %v1824_v25 }
  0xe8   :  { %631 = vmatpush.msrb.mxu2 %v1879_v43  ;;  %651 = vmatpush.msrb.mxu3 %v1829_v26 }
  0xe9   :  { %592 = vmatpush.msrb.mxu0 %v1834_v28  ;;  %612 = vmatpush.msrb.mxu1 %v1836_v29 }
  0xea   :  { %632 = vmatpush.msrb.mxu2 %v1891_v47  ;;  %652 = vmatpush.msrb.mxu3 %v1841_v30 }
  0xeb   :  { %593 = vmatpush.msrb.mxu0 %v1846_v32  ;;  %613 = vmatpush.msrb.mxu1 %v1848_v33 }
  0xec   :  { %633 = vmatpush.msrb.mxu2 %v2695_v34  ;;  %653 = vmatpush.msrb.mxu3 %v2696_v36 }
  0xed   :  { %594 = vmatpush.msrb.mxu0 %v2697_v37  ;;  %614 = vmatpush.msrb.mxu1 %v2698_v40 }
  0xee   :  { %634 = vmatpush.msrb.mxu2 %v2699_v51  ;;  %654 = vmatpush.msrb.mxu3 %v2700_v49 }
  0xef   :  { %595 = vmatpush.msrb.mxu0 %v2701_v48  ;;  %615 = vmatpush.msrb.mxu1 %v2702_v61 }
  0xf0   :  { %635 = vmatpush.msrb.mxu2 %v2703_v62  ;;  %655 = vmatpush.msrb.mxu3 %v2704_v0 }
  0xf1   :  { %596 = vmatpush.msrb.mxu0 %v2705_v59  ;;  %616 = vmatpush.msrb.mxu1 %v2706_v50 }
  0xf2   :  { %636 = vmatpush.msrb.mxu2 %v2707_v52  ;;  %656 = vmatpush.msrb.mxu3 %v2708_v46 }
  0xf3   :  { %597 = vmatpush.msrb.mxu0 %v2709_v54  ;;  %617 = vmatpush.msrb.mxu1 %v2710_v56  ;;  %v2720_v54 = vld [vmem:[#allocation37_spill] sm:$0xff]  ;;  %v272_v56 = vld [vmem:[#allocation4 + $0x20] sm:$0xff] }
  0xf4   :  { %637 = vmatpush.msrb.mxu2 %v2711_v45  ;;  %657 = vmatpush.msrb.mxu3 %v2712_v42  ;;  %v273_v45 = vld [vmem:[#allocation4 + $0x28] sm:$0xff] }
  0xf5   :  { %598 = vmatpush.msrb.mxu0 %v2713_v63  ;;  %618 = vmatpush.msrb.mxu1 %v2714_v57 }
  0xf6   :  { %638 = vmatpush.msrb.mxu2 %v2715_v38  ;;  %658 = vmatpush.msrb.mxu3 %v2716_v53  ;;  %v275_v38 = vld [vmem:[#allocation4 + $0x38] sm:$0xff] }
  0xf7   :  { %599 = vmatpush.msrb.mxu0 %v2717_v58  ;;  %619 = vmatpush.msrb.mxu1 %v2718_v55 }
  0xf8   :  { %639 = vmatpush.msrb.mxu2 %v2719_v41  ;;  %659 = vmatpush.msrb.mxu3 %v2720_v54  ;;  %v274_v54 = vld [vmem:[#allocation4 + $0x30] sm:$0xff] }
 0x154   :  { %v293_v46 = vpop.f32.mrf.mxu0  ;;  %v313_v42 = vpop.f32.mrf.mxu1 }
 0x155   :  { %v356_v52 = vadd.f32 %v293_v46, %v272_v56  ;;  %v357_v63 = vadd.f32 %v313_v42, %v273_v45 }
 0x157   :  { %v1394_v50 = vmul.f32 -1.442695, %v356_v52  ;;  %v1395_v57 = vmul.f32 -1.442695, %v357_v63 }
 0x159   :  { %1440 = vpow2.f32 %v1394_v50 }
 0x15a   :  { %1442 = vpow2.f32 %v1395_v57 }
 0x15b   :  { %v353_v53 = vpop.f32.mrf.mxu3  ;;  %v333_v61 = vpop.f32.mrf.mxu2 }
 0x15c   :  { %v359_v59 = vadd.f32 %v353_v53, %v275_v38  ;;  %v358_v52 = vadd.f32 %v333_v61, %v274_v54 }
 0x15e   :  { %v1396_v58 = vmul.f32 -1.442695, %v359_v59 }
 0x15f   :  { %v1441_v0 = vpop.eup %1440 }
 0x160   :  { %v1443_v55 = vpop.eup %1442  ;;  %v363_v62 = vadd.f32 1.0, %v1441_v0  ;;  %1444 = vpow2.f32 %v1396_v58 }
 0x161   :  { %v382_v41 = vadd.f32 1.0, %v1443_v55 }
 0x162   :  { %1446 = vrcp.f32 %v363_v62  ;;  %v375_v59 = vand.u32 2147483648, %v363_v62  ;;  %v373_v53 = vand.u32 2147483647, %v363_v62  ;;  %vm369_vm14 = vweird.f32 %v363_v62 }
 0x163   :  { %1448 = vrcp.f32 %v382_v41  ;;  %v394_v38 = vand.u32 2147483648, %v382_v41  ;;  %v392_v55 = vand.u32 2147483647, %v382_v41  ;;  %vm388_vm15 = vweird.f32 %v382_v41 }
 0x164   :  { %vm374_vm2 = vcmp.eq.f32.partialorder %v373_v53, 8.507059e+37 }
 0x165   :  { %vm393_vm3 = vcmp.eq.f32.partialorder %v392_v55, 8.507059e+37 }
 0x166   :  { %v1445_v48 = vpop.eup %1444 }
 0x167   :  { %v402_v46 = vadd.f32 1.0, %v1445_v48  ;;  %v376_v48 = vor.u32 1.1754944e-38, %v375_v59 }
 0x168   :  { %v1447_v56 = vpop.eup %1446 }
 0x169   :  { %v1449_v45 = vpop.eup %1448  ;;  %v365_v50 = vmul.f32 %v1447_v56, %v363_v62  ;;  %1450 = vrcp.f32 %v402_v46  ;;  %vm370_vm12 = vweird.f32 %v1447_v56  ;;  %v414_v59 = vand.u32 2147483648, %v402_v46 }
 0x16a   :  { %v384_v42 = vmul.f32 %v1449_v45, %v382_v41  ;;  %1452 = vtanh.f32 %v358_v52  ;;  %vm389_vm13 = vweird.f32 %v1449_v45  ;;  %vm371_vm0 = vmor %vm369_vm14, %vm370_vm12  ;;  %vm408_vm5 = vweird.f32 %v402_v46 }
 0x16b   :  { %v366_v63 = vsub.f32 1.0, %v365_v50  ;;  %vm390_vm1 = vmor %vm388_vm15, %vm389_vm13  ;;  %v395_v50 = vor.u32 1.1754944e-38, %v394_v38  ;;  %v415_v38 = vor.u32 1.1754944e-38, %v414_v59 }
 0x16c   :  { %v385_v57 = vsub.f32 1.0, %v384_v42 }
 0x16d   :  { %v367_v0 = vmul.f32 %v1447_v56, %v366_v63 }
 0x16e   :  { %v386_v58 = vmul.f32 %v1449_v45, %v385_v57 }
 0x16f   :  { %v1451_v49 = vpop.eup %1450  ;;  %v368_v51 = vadd.f32 %v1447_v56, %v367_v0 }
 0x170   :  { %v387_v61 = vadd.f32 %v1449_v45, %v386_v58  ;;  %v404_v54 = vmul.f32 %v1451_v49, %v402_v46  ;;  %v1453_v52 = vpop.eup %1452  ;;  %vm409_vm4 = vweird.f32 %v1451_v49 }
 0x171   :  { %v372_v42 = vsel %vm371_vm0, %v1447_v56, %v368_v51  ;;  %v412_v51 = vand.u32 2147483647, %v402_v46  ;;  %vm410_vm6 = vmor %vm408_vm5, %vm409_vm4 }
 0x172   :  { %v377_v40 = vsel %vm374_vm2, %v376_v48, %v372_v42  ;;  %v391_v63 = vsel %vm390_vm1, %v1449_v45, %v387_v61  ;;  %v405_v37 = vsub.f32 1.0, %v404_v54 }
 0x173   :  { %v396_v57 = vsel %vm393_vm3, %v395_v50, %v391_v63  ;;  %v419_v36 = vmul.f32 %v1453_v52, %v377_v40  ;;  %vm413_vm7 = vcmp.eq.f32.partialorder %v412_v51, 8.507059e+37  ;;  %v428_v40 = vld [vmem:[#allocation4 + $0x50] sm:$0xff] }
 0x174   :  { %v418_v34 = vmul.f32 %v396_v57, %v2075_v44  ;;  %v406_v0 = vmul.f32 %v1451_v49, %v405_v37 }
 0x176   :  { %v2143_v62 = vadd.f32 %v419_v36, %v418_v34  ;;  %v407_v41 = vadd.f32 %v1451_v49, %v406_v0 }
 0x178   :  { %1454 = vtanh.f32 %v2143_v62  ;;  %v411_v56 = vsel %vm410_vm6, %v1451_v49, %v407_v41 }
 0x179   :  { %v416_v53 = vsel %vm413_vm7, %v415_v38, %v411_v56 }
 0x17e   :  { %v1455_v45 = vpop.eup %1454 }
 0x17f   :  { %v422_v58 = vmul.f32 %v1455_v45, %v416_v53 }
 0x181   :  { %424 = vst [vmem:[#allocation9 + $0x8] sm:$0xff] %v422_v58  ;;  %446 = vmatmul.f32.vlgmr.msra.gmra.mxu0 %v422_v58  ;;  %466 = vmatmul.f32.vlgmr.msra.gmra.mxu1 %v422_v58 }
 0x182   :  { %486 = vmatmul.f32.vlgmr.msra.gmra.mxu2 %v422_v58  ;;  %506 = vmatmul.f32.vlgmr.msra.gmra.mxu3 %v422_v58 }
 0x183   :  { %738 = vmatpush.msra.mxu0 %v2694_v60  ;;  %758 = vmatpush.msra.mxu1 %v1757_v1  ;;  %v2721_v1 = vld [vmem:[#allocation30_spill] sm:$0xff] }
 0x184   :  { %778 = vmatpush.msra.mxu2 %v1801_v17  ;;  %798 = vmatpush.msra.mxu3 %v1759_v2  ;;  %v2722_v2 = vld [vmem:[#allocation17_spill] sm:$0xff]  ;;  %v2737_v17 = vld [vmem:[#allocation40_spill] sm:$0xff] }
 0x185   :  { %739 = vmatpush.msra.mxu0 %v1763_v3  ;;  %759 = vmatpush.msra.mxu1 %v1765_v4  ;;  %v2723_v3 = vld [vmem:[#allocation18_spill] sm:$0xff]  ;;  %v2724_v4 = vld [vmem:[#allocation19_spill] sm:$0xff] }
 0x186   :  { %779 = vmatpush.msra.mxu2 %v1807_v19  ;;  %799 = vmatpush.msra.mxu3 %v1767_v5  ;;  %v2725_v5 = vld [vmem:[#allocation34_spill] sm:$0xff]  ;;  %v2739_v19 = vld [vmem:[#allocation31_spill] sm:$0xff] }
 0x187   :  { %740 = vmatpush.msra.mxu0 %v1770_v6  ;;  %760 = vmatpush.msra.mxu1 %v1772_v7  ;;  %v2726_v6 = vld [vmem:[#allocation20_spill] sm:$0xff]  ;;  %v2727_v7 = vld [vmem:[#allocation21_spill] sm:$0xff] }
 0x188   :  { %780 = vmatpush.msra.mxu2 %v1819_v23  ;;  %800 = vmatpush.msra.mxu3 %v1776_v8  ;;  %v2728_v8 = vld [vmem:[#allocation22_spill] sm:$0xff]  ;;  %v2743_v23 = vld [vmem:[#allocation35_spill] sm:$0xff] }
 0x189   :  { %741 = vmatpush.msra.mxu0 %v1779_v9  ;;  %761 = vmatpush.msra.mxu1 %v1781_v10  ;;  %v2729_v9 = vld [vmem:[#allocation38_spill] sm:$0xff]  ;;  %v2730_v10 = vld [vmem:[#allocation23_spill] sm:$0xff] }
 0x18a   :  { %781 = vmatpush.msra.mxu2 %v1831_v27  ;;  %801 = vmatpush.msra.mxu3 %v1785_v11  ;;  %v2731_v11 = vld [vmem:[#allocation24_spill] sm:$0xff]  ;;  %v426_v27 = vld [vmem:[#allocation4 + $0x40] sm:$0xff] }
 0x18b   :  { %742 = vmatpush.msra.mxu0 %v1788_v12  ;;  %762 = vmatpush.msra.mxu1 %v1790_v13  ;;  %v2732_v12 = vld [vmem:[#allocation25_spill] sm:$0xff]  ;;  %v2733_v13 = vld [vmem:[#allocation39_spill] sm:$0xff] }
 0x18c   :  { %782 = vmatpush.msra.mxu2 %v1843_v31  ;;  %802 = vmatpush.msra.mxu3 %v1794_v14  ;;  %v2734_v14 = vld [vmem:[#allocation26_spill] sm:$0xff] }
 0x18d   :  { %743 = vmatpush.msra.mxu0 %v1797_v15  ;;  %763 = vmatpush.msra.mxu1 %v1799_v16  ;;  %v2735_v15 = vld [vmem:[#allocation27_spill] sm:$0xff]  ;;  %v2736_v16 = vld [vmem:[#allocation28_spill] sm:$0xff] }
 0x18e   :  { %783 = vmatpush.msra.mxu2 %v1855_v35  ;;  %803 = vmatpush.msra.mxu3 %v1805_v18  ;;  %v2738_v18 = vld [vmem:[#allocation29_spill] sm:$0xff] }
 0x18f   :  { %744 = vmatpush.msra.mxu0 %v1810_v20  ;;  %764 = vmatpush.msra.mxu1 %v1812_v21  ;;  %v2740_v20 = vld [vmem:[#allocation32_spill] sm:$0xff]  ;;  %v2741_v21 = vld [vmem:[#allocation41_spill] sm:$0xff] }
 0x190   :  { %784 = vmatpush.msra.mxu2 %v1867_v39  ;;  %804 = vmatpush.msra.mxu3 %v1817_v22  ;;  %v2742_v22 = vld [vmem:[#allocation33_spill] sm:$0xff]  ;;  %v429_v39 = vld [vmem:[#allocation4 + $0x58] sm:$0xff] }
 0x191   :  { %745 = vmatpush.msra.mxu0 %v1822_v24  ;;  %765 = vmatpush.msra.mxu1 %v1824_v25  ;;  %v2744_v24 = vld [vmem:[#allocation36_spill] sm:$0xff]  ;;  %v2745_v25 = vld [vmem:[#allocation42_spill] sm:$0xff] }
 0x192   :  { %785 = vmatpush.msra.mxu2 %v1879_v43  ;;  %805 = vmatpush.msra.mxu3 %v1829_v26  ;;  %v2746_v26 = vld [vmem:[#allocation37_spill] sm:$0xff] }
 0x193   :  { %746 = vmatpush.msra.mxu0 %v1834_v28  ;;  %766 = vmatpush.msra.mxu1 %v1836_v29  ;;  %v427_v28 = vld [vmem:[#allocation4 + $0x48] sm:$0xff] }
 0x194   :  { %786 = vmatpush.msra.mxu2 %v1891_v47  ;;  %806 = vmatpush.msra.mxu3 %v1841_v30 }
 0x195   :  { %747 = vmatpush.msra.mxu0 %v1846_v32  ;;  %767 = vmatpush.msra.mxu1 %v1848_v33 }
 0x196   :  { %787 = vmatpush.msra.mxu2 %v2721_v1  ;;  %807 = vmatpush.msra.mxu3 %v2722_v2 }
 0x197   :  { %748 = vmatpush.msra.mxu0 %v2723_v3  ;;  %768 = vmatpush.msra.mxu1 %v2724_v4 }
 0x198   :  { %788 = vmatpush.msra.mxu2 %v2725_v5  ;;  %808 = vmatpush.msra.mxu3 %v2726_v6 }
 0x199   :  { %749 = vmatpush.msra.mxu0 %v2727_v7  ;;  %769 = vmatpush.msra.mxu1 %v2728_v8 }
 0x19a   :  { %789 = vmatpush.msra.mxu2 %v2729_v9  ;;  %809 = vmatpush.msra.mxu3 %v2730_v10 }
 0x19b   :  { %750 = vmatpush.msra.mxu0 %v2731_v11  ;;  %770 = vmatpush.msra.mxu1 %v2732_v12 }
 0x19c   :  { %790 = vmatpush.msra.mxu2 %v2733_v13  ;;  %810 = vmatpush.msra.mxu3 %v2734_v14 }
 0x19d   :  { %751 = vmatpush.msra.mxu0 %v2735_v15  ;;  %771 = vmatpush.msra.mxu1 %v2736_v16 }
 0x19e   :  { %791 = vmatpush.msra.mxu2 %v2737_v17  ;;  %811 = vmatpush.msra.mxu3 %v2738_v18 }
 0x19f   :  { %752 = vmatpush.msra.mxu0 %v2739_v19  ;;  %772 = vmatpush.msra.mxu1 %v2740_v20 }
 0x1a0   :  { %792 = vmatpush.msra.mxu2 %v2741_v21  ;;  %812 = vmatpush.msra.mxu3 %v2742_v22  ;;  %v2217_v21 = vld [vmem:[#allocation7 + $0x1e8] sm:$0xff]  ;;  %v2220_v22 = vld [vmem:[#allocation7 + $0x1f0] sm:$0xff] }
 0x1a1   :  { %753 = vmatpush.msra.mxu0 %v2743_v23  ;;  %773 = vmatpush.msra.mxu1 %v2744_v24  ;;  %v2223_v23 = vld [vmem:[#allocation7 + $0x1f8] sm:$0xff]  ;;  %v2226_v24 = vld [vmem:[#allocation7 + $0x1c0] sm:$0xff] }
 0x1a2   :  { %793 = vmatpush.msra.mxu2 %v2745_v25  ;;  %813 = vmatpush.msra.mxu3 %v2746_v26  ;;  %v2229_v25 = vld [vmem:[#allocation7 + $0x1c8] sm:$0xff]  ;;  %v2232_v26 = vld [vmem:[#allocation7 + $0x1d0] sm:$0xff] }
 0x1fe   :  { %v447_v29 = vpop.f32.mrf.mxu0  ;;  %v467_v30 = vpop.f32.mrf.mxu1 }
 0x1ff   :  { %v510_v31 = vadd.f32 %v447_v29, %v426_v27  ;;  %v511_v32 = vadd.f32 %v467_v30, %v427_v28  ;;  %v2235_v27 = vld [vmem:[#allocation7 + $0x1d8] sm:$0xff]  ;;  %v2238_v28 = vld [vmem:[#allocation7 + $0x1a0] sm:$0xff]  ;;  %v2241_v29 = vld [vmem:[#allocation7 + $0x1a8] sm:$0xff] }
 0x200   :  { %v2244_v30 = vld [vmem:[#allocation7 + $0x1b0] sm:$0xff] }
 0x201   :  { %v1397_v33 = vmul.f32 -1.442695, %v510_v31  ;;  %v1398_v35 = vmul.f32 -1.442695, %v511_v32  ;;  %v2247_v31 = vld [vmem:[#allocation7 + $0x1b8] sm:$0xff]  ;;  %v2250_v32 = vld [vmem:[#allocation7 + $0x180] sm:$0xff] }
 0x203   :  { %1456 = vpow2.f32 %v1397_v33  ;;  %v2253_v33 = vld [vmem:[#allocation7 + $0x188] sm:$0xff] }
 0x204   :  { %1458 = vpow2.f32 %v1398_v35  ;;  %v2256_v35 = vld [vmem:[#allocation7 + $0x190] sm:$0xff] }
 0x205   :  { %v507_v43 = vpop.f32.mrf.mxu3  ;;  %v487_v49 = vpop.f32.mrf.mxu2 }
 0x206   :  { %v513_v47 = vadd.f32 %v507_v43, %v429_v39  ;;  %v512_v61 = vadd.f32 %v487_v49, %v428_v40  ;;  %v2259_v39 = vld [vmem:[#allocation7 + $0x198] sm:$0xff]  ;;  %v2262_v43 = vld [vmem:[#allocation7 + $0x160] sm:$0xff] }
 0x207   :  { %v2283_v40 = vld [vmem:[#allocation7 + $0x158] sm:$0xff]  ;;  %v2286_v49 = vld [vmem:[#allocation7 + $0x120] sm:$0xff] }
 0x208   :  { %v1399_v60 = vmul.f32 -1.442695, %v513_v47  ;;  %v2265_v47 = vld [vmem:[#allocation7 + $0x168] sm:$0xff] }
 0x209   :  { %v1457_v44 = vpop.eup %1456 }
 0x20a   :  { %v1459_v34 = vpop.eup %1458  ;;  %v517_v36 = vadd.f32 1.0, %v1457_v44  ;;  %1460 = vpow2.f32 %v1399_v60  ;;  %v2268_v60 = vld [vmem:[#allocation7 + $0x170] sm:$0xff]  ;;  %v2271_v44 = vld [vmem:[#allocation7 + $0x178] sm:$0xff] }
 0x20b   :  { %v536_v37 = vadd.f32 1.0, %v1459_v34  ;;  %v2274_v34 = vld [vmem:[#allocation7 + $0x140] sm:$0xff] }
 0x20c   :  { %1462 = vrcp.f32 %v517_v36  ;;  %v529_v57 = vand.u32 2147483648, %v517_v36  ;;  %v527_v59 = vand.u32 2147483647, %v517_v36  ;;  %vm523_vm10 = vweird.f32 %v517_v36 }
 0x20d   :  { %1464 = vrcp.f32 %v536_v37  ;;  %v548_v0 = vand.u32 2147483648, %v536_v37  ;;  %v546_v56 = vand.u32 2147483647, %v536_v37  ;;  %vm542_vm11 = vweird.f32 %v536_v37 }
 0x20e   :  { %v530_v53 = vor.u32 1.1754944e-38, %v529_v57  ;;  %vm528_vm14 = vcmp.eq.f32.partialorder %v527_v59, 8.507059e+37  ;;  %v2316_v57 = vld [vmem:[#allocation7 + $0xf0] sm:$0xff]  ;;  %v2325_v59 = vld [vmem:[#allocation7 + $0xc8] sm:$0xff] }
 0x20f   :  { %v549_v2 = vor.u32 1.1754944e-38, %v548_v0  ;;  %vm547_vm15 = vcmp.eq.f32.partialorder %v546_v56, 8.507059e+37  ;;  %v2319_v0 = vld [vmem:[#allocation7 + $0xf8] sm:$0xff] }
 0x210   :  { %v1461_v46 = vpop.eup %1460  ;;  %v2331_v56 = vld [vmem:[#allocation7 + $0xd8] sm:$0xff] }
 0x211   :  { %v556_v55 = vadd.f32 1.0, %v1461_v46  ;;  %v2289_v46 = vld [vmem:[#allocation7 + $0x128] sm:$0xff]  ;;  %2748 = vst [vmem:[#allocation30_spill] sm:$0xff] %v2331_v56 }
 0x212   :  { %v1463_v48 = vpop.eup %1462 }
 0x213   :  { %v1465_v54 = vpop.eup %1464  ;;  %v519_v50 = vmul.f32 %v1463_v48, %v517_v36  ;;  %1466 = vrcp.f32 %v556_v55  ;;  %vm524_vm8 = vweird.f32 %v1463_v48  ;;  %v568_v14 = vand.u32 2147483648, %v556_v55  ;;  %v2277_v36 = vld [vmem:[#allocation7 + $0x148] sm:$0xff] }
 0x214   :  { %v538_v42 = vmul.f32 %v1465_v54, %v536_v37  ;;  %1468 = vtanh.f32 %v512_v61  ;;  %vm543_vm9 = vweird.f32 %v1465_v54  ;;  %vm525_vm12 = vmor %vm523_vm10, %vm524_vm8  ;;  %vm562_vm1 = vweird.f32 %v556_v55  ;;  %v2280_v37 = vld [vmem:[#allocation7 + $0x150] sm:$0xff]  ;;  %v2298_v61 = vld [vmem:[#allocation7 + $0x100] sm:$0xff] }
 0x215   :  { %v520_v52 = vsub.f32 1.0, %v519_v50  ;;  %vm544_vm13 = vmor %vm542_vm11, %vm543_vm9  ;;  %v566_v15 = vand.u32 2147483647, %v556_v55  ;;  %v569_v17 = vor.u32 1.1754944e-38, %v568_v14  ;;  %v2304_v50 = vld [vmem:[#allocation7 + $0x110] sm:$0xff]  ;;  %v2382_v14 = vld [vmem:[#allocation7 + $0x20] sm:$0xff] }
 0x216   :  { %v539_v63 = vsub.f32 1.0, %v538_v42  ;;  %v2307_v42 = vld [vmem:[#allocation7 + $0x118] sm:$0xff]  ;;  %2765 = vst [vmem:[#allocation29_spill] sm:$0xff] %v2382_v14 }
 0x217   :  { %v521_v41 = vmul.f32 %v1463_v48, %v520_v52  ;;  %vm567_vm3 = vcmp.eq.f32.partialorder %v566_v15, 8.507059e+37  ;;  %v2310_v52 = vld [vmem:[#allocation7 + $0xe0] sm:$0xff]  ;;  %v2385_v15 = vld [vmem:[#allocation7 + $0x28] sm:$0xff] }
 0x218   :  { %v540_v51 = vmul.f32 %v1465_v54, %v539_v63  ;;  %v2313_v63 = vld [vmem:[#allocation7 + $0xe8] sm:$0xff]  ;;  %2766 = vst [vmem:[#allocation31_spill] sm:$0xff] %v2385_v15 }
 0x219   :  { %v1467_v38 = vpop.eup %1466  ;;  %v522_v45 = vadd.f32 %v1463_v48, %v521_v41  ;;  %v2322_v41 = vld [vmem:[#allocation7 + $0xc0] sm:$0xff] }
 0x21a   :  { %v541_v58 = vadd.f32 %v1465_v54, %v540_v51  ;;  %v558_v1 = vmul.f32 %v1467_v38, %v556_v55  ;;  %v1469_v4 = vpop.eup %1468  ;;  %vm563_vm0 = vweird.f32 %v1467_v38  ;;  %v2292_v55 = vld [vmem:[#allocation7 + $0x130] sm:$0xff] }
 0x21b   :  { %v526_v3 = vsel %vm525_vm12, %v1463_v48, %v522_v45  ;;  %vm564_vm2 = vmor %vm562_vm1, %vm563_vm0  ;;  %v2295_v48 = vld [vmem:[#allocation7 + $0x138] sm:$0xff]  ;;  %v2328_v51 = vld [vmem:[#allocation7 + $0xd0] sm:$0xff] }
 0x21c   :  { %v531_v5 = vsel %vm528_vm14, %v530_v53, %v526_v3  ;;  %v545_v6 = vsel %vm544_vm13, %v1465_v54, %v541_v58  ;;  %v559_v7 = vsub.f32 1.0, %v558_v1  ;;  %v2301_v54 = vld [vmem:[#allocation7 + $0x108] sm:$0xff]  ;;  %2747 = vst [vmem:[#allocation16_spill] sm:$0xff] %v2328_v51  ;;  %v2340_v53 = vld [vmem:[#allocation7 + $0xb0] sm:$0xff]  ;;  %v2343_v58 = vld [vmem:[#allocation7 + $0xb8] sm:$0xff] }
 0x21d   :  { %v550_v8 = vsel %vm547_vm15, %v549_v2, %v545_v6  ;;  %v573_v9 = vmul.f32 %v1469_v4, %v531_v5  ;;  %v2337_v45 = vld [vmem:[#allocation7 + $0xa8] sm:$0xff]  ;;  %2751 = vst [vmem:[#allocation19_spill] sm:$0xff] %v2340_v53  ;;  %v2346_v1 = vld [vmem:[#allocation7 + $0x80] sm:$0xff]  ;;  %v2352_v3 = vld [vmem:[#allocation7 + $0x90] sm:$0xff] }
 0x21e   :  { %v572_v10 = vmul.f32 %v550_v8, %v2143_v62  ;;  %v560_v11 = vmul.f32 %v1467_v38, %v559_v7  ;;  %v2214_v62 = vld [vmem:[#allocation7 + $0x1e0] sm:$0xff]  ;;  %2750 = vst [vmem:[#allocation18_spill] sm:$0xff] %v2337_v45  ;;  %v2349_v2 = vld [vmem:[#allocation7 + $0x88] sm:$0xff]  ;;  %v2355_v4 = vld [vmem:[#allocation7 + $0x98] sm:$0xff] }
 0x21f   :  { %2752 = vst [vmem:[#allocation34_spill] sm:$0xff] %v2343_v58  ;;  %v2358_v5 = vld [vmem:[#allocation7 + $0x60] sm:$0xff]  ;;  %v2361_v6 = vld [vmem:[#allocation7 + $0x68] sm:$0xff]  ;;  %v2364_v7 = vld [vmem:[#allocation7 + $0x70] sm:$0xff] }
 0x220   :  { %v2211_v12 = vadd.f32 %v573_v9, %v572_v10  ;;  %v561_v13 = vadd.f32 %v1467_v38, %v560_v11  ;;  %2753 = vst [vmem:[#allocation20_spill] sm:$0xff] %v2346_v1  ;;  %v2367_v8 = vld [vmem:[#allocation7 + $0x78] sm:$0xff]  ;;  %v2370_v9 = vld [vmem:[#allocation7 + $0x40] sm:$0xff]  ;;  %v2373_v10 = vld [vmem:[#allocation7 + $0x48] sm:$0xff] }
 0x221   :  { %2754 = vst [vmem:[#allocation21_spill] sm:$0xff] %v2349_v2  ;;  %v2376_v11 = vld [vmem:[#allocation7 + $0x50] sm:$0xff] }
 0x222   :  { %1470 = vtanh.f32 %v2211_v12  ;;  %v565_v16 = vsel %vm564_vm2, %v1467_v38, %v561_v13  ;;  %v2334_v38 = vld [vmem:[#allocation7 + $0xa0] sm:$0xff]  ;;  %2755 = vst [vmem:[#allocation22_spill] sm:$0xff] %v2352_v3  ;;  %v2379_v13 = vld [vmem:[#allocation7 + $0x58] sm:$0xff] }
 0x223   :  { %v570_v19 = vsel %vm567_vm3, %v569_v17, %v565_v16  ;;  %2749 = vst [vmem:[#allocation17_spill] sm:$0xff] %v2334_v38  ;;  %v2388_v16 = vld [vmem:[#allocation7 + $0x30] sm:$0xff]  ;;  %v2391_v17 = vld [vmem:[#allocation7 + $0x38] sm:$0xff] }
 0x224   :  { %2756 = vst [vmem:[#allocation38_spill] sm:$0xff] %v2355_v4 }
 0x225   :  { %2757 = vst [vmem:[#allocation23_spill] sm:$0xff] %v2358_v5 }
 0x226   :  { %2758 = vst [vmem:[#allocation24_spill] sm:$0xff] %v2361_v6 }
 0x227   :  { %2759 = vst [vmem:[#allocation25_spill] sm:$0xff] %v2364_v7 }
 0x228   :  { %v1471_v18 = vpop.eup %1470  ;;  %2760 = vst [vmem:[#allocation39_spill] sm:$0xff] %v2367_v8 }
 0x229   :  { %v576_v20 = vmul.f32 %v1471_v18, %v570_v19  ;;  %2761 = vst [vmem:[#allocation26_spill] sm:$0xff] %v2370_v9  ;;  %v2394_v18 = vld [vmem:[#allocation7] sm:$0xff]  ;;  %v2397_v19 = vld [vmem:[#allocation7 + $0x8] sm:$0xff] }
 0x22a   :  { %2762 = vst [vmem:[#allocation27_spill] sm:$0xff] %v2373_v10 }
 0x22b   :  { %578 = vst [vmem:[#allocation9 + $0x10] sm:$0xff] %v576_v20  ;;  %600 = vmatmul.f32.vlgmr.msrb.gmra.mxu0 %v576_v20  ;;  %620 = vmatmul.f32.vlgmr.msrb.gmra.mxu1 %v576_v20 }
 0x22c   :  { %640 = vmatmul.f32.vlgmr.msrb.gmra.mxu2 %v576_v20  ;;  %660 = vmatmul.f32.vlgmr.msrb.gmra.mxu3 %v576_v20  ;;  %2763 = vst [vmem:[#allocation28_spill] sm:$0xff] %v2376_v11  ;;  %v2400_v20 = vld [vmem:[#allocation7 + $0x10] sm:$0xff] }
 0x22d   :  { %892 = vmatpush.msrb.mxu0 %v2214_v62  ;;  %912 = vmatpush.msrb.mxu1 %v2217_v21  ;;  %2764 = vst [vmem:[#allocation40_spill] sm:$0xff] %v2379_v13 }
 0x22e   :  { %932 = vmatpush.msrb.mxu2 %v2220_v22  ;;  %952 = vmatpush.msrb.mxu3 %v2223_v23  ;;  %2767 = vst [vmem:[#allocation32_spill] sm:$0xff] %v2388_v16 }
 0x22f   :  { %893 = vmatpush.msrb.mxu0 %v2226_v24  ;;  %913 = vmatpush.msrb.mxu1 %v2229_v25  ;;  %2768 = vst [vmem:[#allocation41_spill] sm:$0xff] %v2391_v17 }
 0x230   :  { %933 = vmatpush.msrb.mxu2 %v2232_v26  ;;  %953 = vmatpush.msrb.mxu3 %v2235_v27  ;;  %2769 = vst [vmem:[#allocation33_spill] sm:$0xff] %v2394_v18 }
 0x231   :  { %894 = vmatpush.msrb.mxu0 %v2238_v28  ;;  %914 = vmatpush.msrb.mxu1 %v2241_v29  ;;  %2770 = vst [vmem:[#allocation35_spill] sm:$0xff] %v2397_v19 }
 0x232   :  { %934 = vmatpush.msrb.mxu2 %v2244_v30  ;;  %954 = vmatpush.msrb.mxu3 %v2247_v31  ;;  %2771 = vst [vmem:[#allocation36_spill] sm:$0xff] %v2400_v20 }
 0x233   :  { %895 = vmatpush.msrb.mxu0 %v2250_v32  ;;  %915 = vmatpush.msrb.mxu1 %v2253_v33 }
 0x234   :  { %935 = vmatpush.msrb.mxu2 %v2256_v35  ;;  %955 = vmatpush.msrb.mxu3 %v2259_v39 }
 0x235   :  { %896 = vmatpush.msrb.mxu0 %v2262_v43  ;;  %916 = vmatpush.msrb.mxu1 %v2265_v47 }
 0x236   :  { %936 = vmatpush.msrb.mxu2 %v2268_v60  ;;  %956 = vmatpush.msrb.mxu3 %v2271_v44 }
 0x237   :  { %897 = vmatpush.msrb.mxu0 %v2274_v34  ;;  %917 = vmatpush.msrb.mxu1 %v2277_v36 }
 0x238   :  { %937 = vmatpush.msrb.mxu2 %v2280_v37  ;;  %957 = vmatpush.msrb.mxu3 %v2283_v40 }
 0x239   :  { %898 = vmatpush.msrb.mxu0 %v2286_v49  ;;  %918 = vmatpush.msrb.mxu1 %v2289_v46 }
 0x23a   :  { %938 = vmatpush.msrb.mxu2 %v2292_v55  ;;  %958 = vmatpush.msrb.mxu3 %v2295_v48 }
 0x23b   :  { %899 = vmatpush.msrb.mxu0 %v2298_v61  ;;  %919 = vmatpush.msrb.mxu1 %v2301_v54 }
 0x23c   :  { %939 = vmatpush.msrb.mxu2 %v2304_v50  ;;  %959 = vmatpush.msrb.mxu3 %v2307_v42 }
 0x23d   :  { %900 = vmatpush.msrb.mxu0 %v2310_v52  ;;  %920 = vmatpush.msrb.mxu1 %v2313_v63 }
 0x23e   :  { %940 = vmatpush.msrb.mxu2 %v2316_v57  ;;  %960 = vmatpush.msrb.mxu3 %v2319_v0 }
 0x23f   :  { %901 = vmatpush.msrb.mxu0 %v2322_v41  ;;  %921 = vmatpush.msrb.mxu1 %v2325_v59 }
 0x240   :  { %941 = vmatpush.msrb.mxu2 %v2328_v51  ;;  %961 = vmatpush.msrb.mxu3 %v2331_v56 }
 0x241   :  { %902 = vmatpush.msrb.mxu0 %v2334_v38  ;;  %922 = vmatpush.msrb.mxu1 %v2337_v45 }
 0x242   :  { %942 = vmatpush.msrb.mxu2 %v2340_v53  ;;  %962 = vmatpush.msrb.mxu3 %v2343_v58 }
 0x243   :  { %903 = vmatpush.msrb.mxu0 %v2346_v1  ;;  %923 = vmatpush.msrb.mxu1 %v2349_v2 }
 0x244   :  { %943 = vmatpush.msrb.mxu2 %v2352_v3  ;;  %963 = vmatpush.msrb.mxu3 %v2355_v4 }
 0x245   :  { %904 = vmatpush.msrb.mxu0 %v2358_v5  ;;  %924 = vmatpush.msrb.mxu1 %v2361_v6 }
 0x246   :  { %944 = vmatpush.msrb.mxu2 %v2364_v7  ;;  %964 = vmatpush.msrb.mxu3 %v2367_v8  ;;  %v583_v8 = vld [vmem:[#allocation4 + $0x78] sm:$0xff] }
 0x247   :  { %905 = vmatpush.msrb.mxu0 %v2370_v9  ;;  %925 = vmatpush.msrb.mxu1 %v2373_v10 }
 0x248   :  { %945 = vmatpush.msrb.mxu2 %v2376_v11  ;;  %965 = vmatpush.msrb.mxu3 %v2379_v13 }
 0x249   :  { %906 = vmatpush.msrb.mxu0 %v2382_v14  ;;  %926 = vmatpush.msrb.mxu1 %v2385_v15  ;;  %v2403_v15 = vld [vmem:[#allocation7 + $0x18] sm:$0xff]  ;;  %v581_v14 = vld [vmem:[#allocation4 + $0x68] sm:$0xff] }
 0x24a   :  { %946 = vmatpush.msrb.mxu2 %v2388_v16  ;;  %966 = vmatpush.msrb.mxu3 %v2391_v17  ;;  %2772 = vst [vmem:[#allocation42_spill] sm:$0xff] %v2403_v15  ;;  %v580_v16 = vld [vmem:[#allocation4 + $0x60] sm:$0xff] }
 0x24b   :  { %907 = vmatpush.msrb.mxu0 %v2394_v18  ;;  %927 = vmatpush.msrb.mxu1 %v2397_v19 }
 0x24c   :  { %947 = vmatpush.msrb.mxu2 %v2400_v20  ;;  %967 = vmatpush.msrb.mxu3 %v2403_v15  ;;  %v582_v15 = vld [vmem:[#allocation4 + $0x70] sm:$0xff] }
 0x2a8   :  { %v601_v13 = vpop.f32.mrf.mxu0  ;;  %v621_v17 = vpop.f32.mrf.mxu1 }
 0x2a9   :  { %v664_v11 = vadd.f32 %v601_v13, %v580_v16  ;;  %v665_v10 = vadd.f32 %v621_v17, %v581_v14 }
 0x2ab   :  { %v1400_v9 = vmul.f32 -1.442695, %v664_v11  ;;  %v1401_v18 = vmul.f32 -1.442695, %v665_v10 }
 0x2ad   :  { %1472 = vpow2.f32 %v1400_v9 }
 0x2ae   :  { %1474 = vpow2.f32 %v1401_v18 }
 0x2af   :  { %v661_v19 = vpop.f32.mrf.mxu3  ;;  %v641_v2 = vpop.f32.mrf.mxu2 }
 0x2b0   :  { %v667_v7 = vadd.f32 %v661_v19, %v583_v8  ;;  %v666_v11 = vadd.f32 %v641_v2, %v582_v15 }
 0x2b2   :  { %v1402_v6 = vmul.f32 -1.442695, %v667_v7 }
 0x2b3   :  { %v1473_v5 = vpop.eup %1472 }
 0x2b4   :  { %v1475_v20 = vpop.eup %1474  ;;  %v671_v4 = vadd.f32 1.0, %v1473_v5  ;;  %1476 = vpow2.f32 %v1402_v6 }
 0x2b5   :  { %v690_v3 = vadd.f32 1.0, %v1475_v20 }
 0x2b6   :  { %1478 = vrcp.f32 %v671_v4  ;;  %v683_v7 = vand.u32 2147483648, %v671_v4  ;;  %v681_v6 = vand.u32 2147483647, %v671_v4  ;;  %vm677_vm6 = vweird.f32 %v671_v4 }
 0x2b7   :  { %1480 = vrcp.f32 %v690_v3  ;;  %v702_v18 = vand.u32 2147483648, %v690_v3  ;;  %v700_v20 = vand.u32 2147483647, %v690_v3  ;;  %vm696_vm7 = vweird.f32 %v690_v3 }
 0x2b8   :  { %vm682_vm10 = vcmp.eq.f32.partialorder %v681_v6, 8.507059e+37 }
 0x2b9   :  { %vm701_vm11 = vcmp.eq.f32.partialorder %v700_v20, 8.507059e+37  ;;  %v2780_v20 = vld [vmem:[#allocation21_spill] sm:$0xff] }
 0x2ba   :  { %v1477_v1 = vpop.eup %1476 }
 0x2bb   :  { %v710_v13 = vadd.f32 1.0, %v1477_v1  ;;  %v684_v1 = vor.u32 1.1754944e-38, %v683_v7 }
 0x2bc   :  { %v1479_v14 = vpop.eup %1478 }
 0x2bd   :  { %v1481_v10 = vpop.eup %1480  ;;  %v673_v9 = vmul.f32 %v1479_v14, %v671_v4  ;;  %1482 = vrcp.f32 %v710_v13  ;;  %vm678_vm4 = vweird.f32 %v1479_v14  ;;  %v722_v7 = vand.u32 2147483648, %v710_v13 }
 0x2be   :  { %v692_v16 = vmul.f32 %v1481_v10, %v690_v3  ;;  %1484 = vtanh.f32 %v666_v11  ;;  %vm697_vm5 = vweird.f32 %v1481_v10  ;;  %vm679_vm8 = vmor %vm677_vm6, %vm678_vm4  ;;  %vm716_vm13 = vweird.f32 %v710_v13 }
 0x2bf   :  { %v674_v17 = vsub.f32 1.0, %v673_v9  ;;  %vm698_vm9 = vmor %vm696_vm7, %vm697_vm5  ;;  %v703_v9 = vor.u32 1.1754944e-38, %v702_v18  ;;  %v723_v18 = vor.u32 1.1754944e-38, %v722_v7  ;;  %v2791_v7 = vld [vmem:[#allocation29_spill] sm:$0xff] }
 0x2c0   :  { %v693_v8 = vsub.f32 1.0, %v692_v16 }
 0x2c1   :  { %v675_v5 = vmul.f32 %v1479_v14, %v674_v17 }
 0x2c2   :  { %v694_v19 = vmul.f32 %v1481_v10, %v693_v8 }
 0x2c3   :  { %v1483_v58 = vpop.eup %1482  ;;  %v676_v53 = vadd.f32 %v1479_v14, %v675_v5 }
 0x2c4   :  { %v695_v2 = vadd.f32 %v1481_v10, %v694_v19  ;;  %v712_v15 = vmul.f32 %v1483_v58, %v710_v13  ;;  %v1485_v11 = vpop.eup %1484  ;;  %vm717_vm12 = vweird.f32 %v1483_v58 }
 0x2c5   :  { %v680_v16 = vsel %vm679_vm8, %v1479_v14, %v676_v53  ;;  %v720_v53 = vand.u32 2147483647, %v710_v13  ;;  %vm718_vm14 = vmor %vm716_vm13, %vm717_vm12  ;;  %v2779_v13 = vld [vmem:[#allocation20_spill] sm:$0xff] }
 0x2c6   :  { %v685_v45 = vsel %vm682_vm10, %v684_v1, %v680_v16  ;;  %v699_v17 = vsel %vm698_vm9, %v1481_v10, %v695_v2  ;;  %v713_v38 = vsub.f32 1.0, %v712_v15  ;;  %v2781_v1 = vld [vmem:[#allocation22_spill] sm:$0xff]  ;;  %v2783_v15 = vld [vmem:[#allocation23_spill] sm:$0xff]  ;;  %v2785_v16 = vld [vmem:[#allocation25_spill] sm:$0xff] }
 0x2c7   :  { %v704_v8 = vsel %vm701_vm11, %v703_v9, %v699_v17  ;;  %v727_v56 = vmul.f32 %v1485_v11, %v685_v45  ;;  %vm721_vm15 = vcmp.eq.f32.partialorder %v720_v53, 8.507059e+37  ;;  %v2777_v45 = vld [vmem:[#allocation19_spill] sm:$0xff]  ;;  %v2782_v2 = vld [vmem:[#allocation38_spill] sm:$0xff]  ;;  %v2784_v9 = vld [vmem:[#allocation24_spill] sm:$0xff] }
 0x2c8   :  { %v726_v51 = vmul.f32 %v704_v8, %v2211_v12  ;;  %v714_v5 = vmul.f32 %v1483_v58, %v713_v38  ;;  %v2773_v12 = vld [vmem:[#allocation16_spill] sm:$0xff]  ;;  %v2776_v38 = vld [vmem:[#allocation18_spill] sm:$0xff]  ;;  %v2786_v11 = vld [vmem:[#allocation39_spill] sm:$0xff] }
 0x2c9   :  { %v2787_v17 = vld [vmem:[#allocation26_spill] sm:$0xff]  ;;  %v2788_v8 = vld [vmem:[#allocation27_spill] sm:$0xff] }
 0x2ca   :  { %v2407_v4 = vadd.f32 %v727_v56, %v726_v51  ;;  %v715_v3 = vadd.f32 %v1483_v58, %v714_v5  ;;  %v2774_v51 = vld [vmem:[#allocation30_spill] sm:$0xff]  ;;  %v2775_v56 = vld [vmem:[#allocation17_spill] sm:$0xff]  ;;  %v2789_v5 = vld [vmem:[#allocation28_spill] sm:$0xff] }
 0x2cb   :  { %v2792_v53 = vld [vmem:[#allocation31_spill] sm:$0xff] }
 0x2cc   :  { %1486 = vtanh.f32 %v2407_v4  ;;  %v719_v14 = vsel %vm718_vm14, %v1483_v58, %v715_v3  ;;  %v2778_v58 = vld [vmem:[#allocation34_spill] sm:$0xff]  ;;  %v2790_v3 = vld [vmem:[#allocation40_spill] sm:$0xff] }
 0x2cd   :  { %v724_v6 = vsel %vm721_vm15, %v723_v18, %v719_v14  ;;  %v2793_v14 = vld [vmem:[#allocation32_spill] sm:$0xff]  ;;  %v2794_v18 = vld [vmem:[#allocation41_spill] sm:$0xff] }
 0x2d2   :  { %v1487_v10 = vpop.eup %1486 }
 0x2d3   :  { %v730_v19 = vmul.f32 %v1487_v10, %v724_v6  ;;  %v2795_v10 = vld [vmem:[#allocation33_spill] sm:$0xff]  ;;  %v2796_v6 = vld [vmem:[#allocation35_spill] sm:$0xff] }
 0x2d5   :  { %732 = vst [vmem:[#allocation9 + $0x18] sm:$0xff] %v730_v19  ;;  %754 = vmatmul.f32.vlgmr.msra.gmra.mxu0 %v730_v19  ;;  %774 = vmatmul.f32.vlgmr.msra.gmra.mxu1 %v730_v19 }
 0x2d6   :  { %794 = vmatmul.f32.vlgmr.msra.gmra.mxu2 %v730_v19  ;;  %814 = vmatmul.f32.vlgmr.msra.gmra.mxu3 %v730_v19  ;;  %v2797_v19 = vld [vmem:[#allocation36_spill] sm:$0xff] }
 0x2d7   :  { %1046 = vmatpush.msra.mxu0 %v2214_v62  ;;  %1066 = vmatpush.msra.mxu1 %v2217_v21 }
 0x2d8   :  { %1086 = vmatpush.msra.mxu2 %v2220_v22  ;;  %1106 = vmatpush.msra.mxu3 %v2223_v23 }
 0x2d9   :  { %1047 = vmatpush.msra.mxu0 %v2226_v24  ;;  %1067 = vmatpush.msra.mxu1 %v2229_v25 }
 0x2da   :  { %1087 = vmatpush.msra.mxu2 %v2232_v26  ;;  %1107 = vmatpush.msra.mxu3 %v2235_v27 }
 0x2db   :  { %1048 = vmatpush.msra.mxu0 %v2238_v28  ;;  %1068 = vmatpush.msra.mxu1 %v2241_v29 }
 0x2dc   :  { %1088 = vmatpush.msra.mxu2 %v2244_v30  ;;  %1108 = vmatpush.msra.mxu3 %v2247_v31 }
 0x2dd   :  { %1049 = vmatpush.msra.mxu0 %v2250_v32  ;;  %1069 = vmatpush.msra.mxu1 %v2253_v33 }
 0x2de   :  { %1089 = vmatpush.msra.mxu2 %v2256_v35  ;;  %1109 = vmatpush.msra.mxu3 %v2259_v39 }
 0x2df   :  { %1050 = vmatpush.msra.mxu0 %v2262_v43  ;;  %1070 = vmatpush.msra.mxu1 %v2265_v47 }
 0x2e0   :  { %1090 = vmatpush.msra.mxu2 %v2268_v60  ;;  %1110 = vmatpush.msra.mxu3 %v2271_v44 }
 0x2e1   :  { %1051 = vmatpush.msra.mxu0 %v2274_v34  ;;  %1071 = vmatpush.msra.mxu1 %v2277_v36 }
 0x2e2   :  { %1091 = vmatpush.msra.mxu2 %v2280_v37  ;;  %1111 = vmatpush.msra.mxu3 %v2283_v40 }
 0x2e3   :  { %1052 = vmatpush.msra.mxu0 %v2286_v49  ;;  %1072 = vmatpush.msra.mxu1 %v2289_v46 }
 0x2e4   :  { %1092 = vmatpush.msra.mxu2 %v2292_v55  ;;  %1112 = vmatpush.msra.mxu3 %v2295_v48 }
 0x2e5   :  { %1053 = vmatpush.msra.mxu0 %v2298_v61  ;;  %1073 = vmatpush.msra.mxu1 %v2301_v54 }
 0x2e6   :  { %1093 = vmatpush.msra.mxu2 %v2304_v50  ;;  %1113 = vmatpush.msra.mxu3 %v2307_v42 }
 0x2e7   :  { %1054 = vmatpush.msra.mxu0 %v2310_v52  ;;  %1074 = vmatpush.msra.mxu1 %v2313_v63 }
 0x2e8   :  { %1094 = vmatpush.msra.mxu2 %v2316_v57  ;;  %1114 = vmatpush.msra.mxu3 %v2319_v0 }
 0x2e9   :  { %1055 = vmatpush.msra.mxu0 %v2322_v41  ;;  %1075 = vmatpush.msra.mxu1 %v2325_v59 }
 0x2ea   :  { %1095 = vmatpush.msra.mxu2 %v2773_v12  ;;  %1115 = vmatpush.msra.mxu3 %v2774_v51 }
 0x2eb   :  { %1056 = vmatpush.msra.mxu0 %v2775_v56  ;;  %1076 = vmatpush.msra.mxu1 %v2776_v38 }
 0x2ec   :  { %1096 = vmatpush.msra.mxu2 %v2777_v45  ;;  %1116 = vmatpush.msra.mxu3 %v2778_v58 }
 0x2ed   :  { %1057 = vmatpush.msra.mxu0 %v2779_v13  ;;  %1077 = vmatpush.msra.mxu1 %v2780_v20 }
 0x2ee   :  { %1097 = vmatpush.msra.mxu2 %v2781_v1  ;;  %1117 = vmatpush.msra.mxu3 %v2782_v2 }
 0x2ef   :  { %1058 = vmatpush.msra.mxu0 %v2783_v15  ;;  %1078 = vmatpush.msra.mxu1 %v2784_v9 }
 0x2f0   :  { %1098 = vmatpush.msra.mxu2 %v2785_v16  ;;  %1118 = vmatpush.msra.mxu3 %v2786_v11 }
 0x2f1   :  { %1059 = vmatpush.msra.mxu0 %v2787_v17  ;;  %1079 = vmatpush.msra.mxu1 %v2788_v8  ;;  %v2798_v17 = vld [vmem:[#allocation42_spill] sm:$0xff]  ;;  %v734_v8 = vld [vmem:[#allocation4 + $0x80] sm:$0xff] }
 0x2f2   :  { %1099 = vmatpush.msra.mxu2 %v2789_v5  ;;  %1119 = vmatpush.msra.mxu3 %v2790_v3  ;;  %v735_v5 = vld [vmem:[#allocation4 + $0x88] sm:$0xff] }
 0x2f3   :  { %1060 = vmatpush.msra.mxu0 %v2791_v7  ;;  %1080 = vmatpush.msra.mxu1 %v2792_v53 }
 0x2f4   :  { %1100 = vmatpush.msra.mxu2 %v2793_v14  ;;  %1120 = vmatpush.msra.mxu3 %v2794_v18  ;;  %v737_v14 = vld [vmem:[#allocation4 + $0x98] sm:$0xff] }
 0x2f5   :  { %1061 = vmatpush.msra.mxu0 %v2795_v10  ;;  %1081 = vmatpush.msra.mxu1 %v2796_v6 }
 0x2f6   :  { %1101 = vmatpush.msra.mxu2 %v2797_v19  ;;  %1121 = vmatpush.msra.mxu3 %v2798_v17  ;;  %v736_v17 = vld [vmem:[#allocation4 + $0x90] sm:$0xff] }
 0x352   :  { %v755_v11 = vpop.f32.mrf.mxu0  ;;  %v775_v3 = vpop.f32.mrf.mxu1 }
 0x353   :  { %v818_v16 = vadd.f32 %v755_v11, %v734_v8  ;;  %v819_v7 = vadd.f32 %v775_v3, %v735_v5 }
 0x355   :  { %v1403_v9 = vmul.f32 -1.442695, %v818_v16  ;;  %v1404_v53 = vmul.f32 -1.442695, %v819_v7 }
 0x357   :  { %1488 = vpow2.f32 %v1403_v9 }
 0x358   :  { %1490 = vpow2.f32 %v1404_v53 }
 0x359   :  { %v815_v18 = vpop.f32.mrf.mxu3  ;;  %v795_v20 = vpop.f32.mrf.mxu2 }
 0x35a   :  { %v821_v15 = vadd.f32 %v815_v18, %v737_v14  ;;  %v820_v16 = vadd.f32 %v795_v20, %v736_v17 }
 0x35c   :  { %v1405_v10 = vmul.f32 -1.442695, %v821_v15 }
 0x35d   :  { %v1489_v2 = vpop.eup %1488 }
 0x35e   :  { %v1491_v6 = vpop.eup %1490  ;;  %v825_v1 = vadd.f32 1.0, %v1489_v2  ;;  %1492 = vpow2.f32 %v1405_v10 }
 0x35f   :  { %v844_v19 = vadd.f32 1.0, %v1491_v6 }
 0x360   :  { %1494 = vrcp.f32 %v825_v1  ;;  %v837_v15 = vand.u32 2147483648, %v825_v1  ;;  %v835_v18 = vand.u32 2147483647, %v825_v1  ;;  %vm831_vm2 = vweird.f32 %v825_v1 }
 0x361   :  { %1496 = vrcp.f32 %v844_v19  ;;  %v856_v14 = vand.u32 2147483648, %v844_v19  ;;  %v854_v6 = vand.u32 2147483647, %v844_v19  ;;  %vm850_vm3 = vweird.f32 %v844_v19 }
 0x362   :  { %vm836_vm6 = vcmp.eq.f32.partialorder %v835_v18, 8.507059e+37 }
 0x363   :  { %vm855_vm7 = vcmp.eq.f32.partialorder %v854_v6, 8.507059e+37 }
 0x364   :  { %v1493_v13 = vpop.eup %1492 }
 0x365   :  { %v864_v11 = vadd.f32 1.0, %v1493_v13  ;;  %v838_v13 = vor.u32 1.1754944e-38, %v837_v15 }
 0x366   :  { %v1495_v8 = vpop.eup %1494 }
 0x367   :  { %v1497_v5 = vpop.eup %1496  ;;  %v827_v9 = vmul.f32 %v1495_v8, %v825_v1  ;;  %1498 = vrcp.f32 %v864_v11  ;;  %vm832_vm0 = vweird.f32 %v1495_v8  ;;  %v876_v15 = vand.u32 2147483648, %v864_v11 }
 0x368   :  { %v846_v3 = vmul.f32 %v1497_v5, %v844_v19  ;;  %1500 = vtanh.f32 %v820_v16  ;;  %vm851_vm1 = vweird.f32 %v1497_v5  ;;  %vm833_vm4 = vmor %vm831_vm2, %vm832_vm0  ;;  %vm870_vm9 = vweird.f32 %v864_v11 }
 0x369   :  { %v828_v7 = vsub.f32 1.0, %v827_v9  ;;  %vm852_vm5 = vmor %vm850_vm3, %vm851_vm1  ;;  %v857_v9 = vor.u32 1.1754944e-38, %v856_v14  ;;  %v877_v14 = vor.u32 1.1754944e-38, %v876_v15 }
 0x36a   :  { %v847_v53 = vsub.f32 1.0, %v846_v3 }
 0x36b   :  { %v829_v2 = vmul.f32 %v1495_v8, %v828_v7 }
 0x36c   :  { %v848_v10 = vmul.f32 %v1497_v5, %v847_v53 }
 0x36d   :  { %v1499_v58 = vpop.eup %1498  ;;  %v830_v45 = vadd.f32 %v1495_v8, %v829_v2 }
 0x36e   :  { %v849_v20 = vadd.f32 %v1497_v5, %v848_v10  ;;  %v866_v17 = vmul.f32 %v1499_v58, %v864_v11  ;;  %v1501_v16 = vpop.eup %1500  ;;  %vm871_vm8 = vweird.f32 %v1499_v58 }
 0x36f   :  { %v834_v3 = vsel %vm833_vm4, %v1495_v8, %v830_v45  ;;  %v874_v45 = vand.u32 2147483647, %v864_v11  ;;  %vm872_vm10 = vmor %vm870_vm9, %vm871_vm8 }
 0x370   :  { %v839_v38 = vsel %vm836_vm6, %v838_v13, %v834_v3  ;;  %v853_v7 = vsel %vm852_vm5, %v1497_v5, %v849_v20  ;;  %v867_v56 = vsub.f32 1.0, %v866_v17 }
 0x371   :  { %v858_v53 = vsel %vm855_vm7, %v857_v9, %v853_v7  ;;  %v881_v51 = vmul.f32 %v1501_v16, %v839_v38  ;;  %vm875_vm11 = vcmp.eq.f32.partialorder %v874_v45, 8.507059e+37  ;;  %v890_v38 = vld [vmem:[#allocation4 + $0xb0] sm:$0xff] }
 0x372   :  { %v880_v12 = vmul.f32 %v858_v53, %v2407_v4  ;;  %v868_v2 = vmul.f32 %v1499_v58, %v867_v56 }
 0x374   :  { %v2475_v1 = vadd.f32 %v881_v51, %v880_v12  ;;  %v869_v19 = vadd.f32 %v1499_v58, %v868_v2 }
 0x376   :  { %1502 = vtanh.f32 %v2475_v1  ;;  %v873_v8 = vsel %vm872_vm10, %v1499_v58, %v869_v19 }
 0x377   :  { %v878_v18 = vsel %vm875_vm11, %v877_v14, %v873_v8 }
 0x37c   :  { %v1503_v5 = vpop.eup %1502 }
 0x37d   :  { %v884_v10 = vmul.f32 %v1503_v5, %v878_v18 }
 0x37f   :  { %886 = vst [vmem:[#allocation9 + $0x20] sm:$0xff] %v884_v10  ;;  %908 = vmatmul.f32.vlgmr.msrb.gmra.mxu0 %v884_v10  ;;  %928 = vmatmul.f32.vlgmr.msrb.gmra.mxu1 %v884_v10 }
 0x380   :  { %948 = vmatmul.f32.vlgmr.msrb.gmra.mxu2 %v884_v10  ;;  %968 = vmatmul.f32.vlgmr.msrb.gmra.mxu3 %v884_v10 }
 0x381   :  { %1200 = vmatpush.msrb.mxu0 %v2214_v62  ;;  %1220 = vmatpush.msrb.mxu1 %v2217_v21  ;;  %v2799_v62 = vld [vmem:[#allocation16_spill] sm:$0xff]  ;;  %v2800_v21 = vld [vmem:[#allocation30_spill] sm:$0xff] }
 0x382   :  { %1240 = vmatpush.msrb.mxu2 %v2220_v22  ;;  %1260 = vmatpush.msrb.mxu3 %v2223_v23  ;;  %v2801_v22 = vld [vmem:[#allocation17_spill] sm:$0xff]  ;;  %v2802_v23 = vld [vmem:[#allocation18_spill] sm:$0xff] }
 0x383   :  { %1201 = vmatpush.msrb.mxu0 %v2226_v24  ;;  %1221 = vmatpush.msrb.mxu1 %v2229_v25  ;;  %v2803_v24 = vld [vmem:[#allocation19_spill] sm:$0xff]  ;;  %v2804_v25 = vld [vmem:[#allocation34_spill] sm:$0xff] }
 0x384   :  { %1241 = vmatpush.msrb.mxu2 %v2232_v26  ;;  %1261 = vmatpush.msrb.mxu3 %v2235_v27  ;;  %v2805_v26 = vld [vmem:[#allocation20_spill] sm:$0xff]  ;;  %v2806_v27 = vld [vmem:[#allocation21_spill] sm:$0xff] }
 0x385   :  { %1202 = vmatpush.msrb.mxu0 %v2238_v28  ;;  %1222 = vmatpush.msrb.mxu1 %v2241_v29  ;;  %v2807_v28 = vld [vmem:[#allocation22_spill] sm:$0xff] }
 0x386   :  { %1242 = vmatpush.msrb.mxu2 %v2244_v30  ;;  %1262 = vmatpush.msrb.mxu3 %v2247_v31  ;;  %v2808_v29 = vld [vmem:[#allocation38_spill] sm:$0xff]  ;;  %v2809_v30 = vld [vmem:[#allocation23_spill] sm:$0xff]  ;;  %v2810_v31 = vld [vmem:[#allocation24_spill] sm:$0xff] }
 0x387   :  { %1203 = vmatpush.msrb.mxu0 %v2250_v32  ;;  %1223 = vmatpush.msrb.mxu1 %v2253_v33  ;;  %v2811_v32 = vld [vmem:[#allocation25_spill] sm:$0xff]  ;;  %v2812_v33 = vld [vmem:[#allocation39_spill] sm:$0xff] }
 0x388   :  { %1243 = vmatpush.msrb.mxu2 %v2256_v35  ;;  %1263 = vmatpush.msrb.mxu3 %v2259_v39  ;;  %v2813_v35 = vld [vmem:[#allocation26_spill] sm:$0xff]  ;;  %v2814_v39 = vld [vmem:[#allocation27_spill] sm:$0xff] }
 0x389   :  { %1204 = vmatpush.msrb.mxu0 %v2262_v43  ;;  %1224 = vmatpush.msrb.mxu1 %v2265_v47  ;;  %v2815_v43 = vld [vmem:[#allocation28_spill] sm:$0xff] }
 0x38a   :  { %1244 = vmatpush.msrb.mxu2 %v2268_v60  ;;  %1264 = vmatpush.msrb.mxu3 %v2271_v44  ;;  %v2816_v47 = vld [vmem:[#allocation40_spill] sm:$0xff]  ;;  %v2817_v60 = vld [vmem:[#allocation29_spill] sm:$0xff]  ;;  %v2818_v44 = vld [vmem:[#allocation31_spill] sm:$0xff] }
 0x38b   :  { %1205 = vmatpush.msrb.mxu0 %v2274_v34  ;;  %1225 = vmatpush.msrb.mxu1 %v2277_v36  ;;  %v2819_v34 = vld [vmem:[#allocation32_spill] sm:$0xff]  ;;  %v2820_v36 = vld [vmem:[#allocation41_spill] sm:$0xff] }
 0x38c   :  { %1245 = vmatpush.msrb.mxu2 %v2280_v37  ;;  %1265 = vmatpush.msrb.mxu3 %v2283_v40  ;;  %v2821_v37 = vld [vmem:[#allocation33_spill] sm:$0xff]  ;;  %v2822_v40 = vld [vmem:[#allocation35_spill] sm:$0xff] }
 0x38d   :  { %1206 = vmatpush.msrb.mxu0 %v2286_v49  ;;  %1226 = vmatpush.msrb.mxu1 %v2289_v46  ;;  %v2823_v49 = vld [vmem:[#allocation36_spill] sm:$0xff]  ;;  %v2824_v46 = vld [vmem:[#allocation42_spill] sm:$0xff] }
 0x38e   :  { %1246 = vmatpush.msrb.mxu2 %v2292_v55  ;;  %1266 = vmatpush.msrb.mxu3 %v2295_v48  ;;  %v888_v55 = vld [vmem:[#allocation4 + $0xa0] sm:$0xff]  ;;  %v889_v48 = vld [vmem:[#allocation4 + $0xa8] sm:$0xff] }
 0x38f   :  { %1207 = vmatpush.msrb.mxu0 %v2298_v61  ;;  %1227 = vmatpush.msrb.mxu1 %v2301_v54 }
 0x390   :  { %1247 = vmatpush.msrb.mxu2 %v2304_v50  ;;  %1267 = vmatpush.msrb.mxu3 %v2307_v42 }
 0x391   :  { %1208 = vmatpush.msrb.mxu0 %v2310_v52  ;;  %1228 = vmatpush.msrb.mxu1 %v2313_v63 }
 0x392   :  { %1248 = vmatpush.msrb.mxu2 %v2316_v57  ;;  %1268 = vmatpush.msrb.mxu3 %v2319_v0  ;;  %v891_v57 = vld [vmem:[#allocation4 + $0xb8] sm:$0xff] }
 0x393   :  { %1209 = vmatpush.msrb.mxu0 %v2322_v41  ;;  %1229 = vmatpush.msrb.mxu1 %v2325_v59 }
 0x394   :  { %1249 = vmatpush.msrb.mxu2 %v2799_v62  ;;  %1269 = vmatpush.msrb.mxu3 %v2800_v21 }
 0x395   :  { %1210 = vmatpush.msrb.mxu0 %v2801_v22  ;;  %1230 = vmatpush.msrb.mxu1 %v2802_v23 }
 0x396   :  { %1250 = vmatpush.msrb.mxu2 %v2803_v24  ;;  %1270 = vmatpush.msrb.mxu3 %v2804_v25 }
 0x397   :  { %1211 = vmatpush.msrb.mxu0 %v2805_v26  ;;  %1231 = vmatpush.msrb.mxu1 %v2806_v27 }
 0x398   :  { %1251 = vmatpush.msrb.mxu2 %v2807_v28  ;;  %1271 = vmatpush.msrb.mxu3 %v2808_v29 }
 0x399   :  { %1212 = vmatpush.msrb.mxu0 %v2809_v30  ;;  %1232 = vmatpush.msrb.mxu1 %v2810_v31 }
 0x39a   :  { %1252 = vmatpush.msrb.mxu2 %v2811_v32  ;;  %1272 = vmatpush.msrb.mxu3 %v2812_v33 }
 0x39b   :  { %1213 = vmatpush.msrb.mxu0 %v2813_v35  ;;  %1233 = vmatpush.msrb.mxu1 %v2814_v39 }
 0x39c   :  { %1253 = vmatpush.msrb.mxu2 %v2815_v43  ;;  %1273 = vmatpush.msrb.mxu3 %v2816_v47 }
 0x39d   :  { %1214 = vmatpush.msrb.mxu0 %v2817_v60  ;;  %1234 = vmatpush.msrb.mxu1 %v2818_v44 }
 0x39e   :  { %1254 = vmatpush.msrb.mxu2 %v2819_v34  ;;  %1274 = vmatpush.msrb.mxu3 %v2820_v36  ;;  %v1043_v34 = vld [vmem:[#allocation4 + $0xc8] sm:$0xff] }
 0x39f   :  { %1215 = vmatpush.msrb.mxu0 %v2821_v37  ;;  %1235 = vmatpush.msrb.mxu1 %v2822_v40 }
 0x3a0   :  { %1255 = vmatpush.msrb.mxu2 %v2823_v49  ;;  %1275 = vmatpush.msrb.mxu3 %v2824_v46 }
 0x3fc   :  { %v909_v61 = vpop.f32.mrf.mxu0  ;;  %v929_v54 = vpop.f32.mrf.mxu1 }
 0x3fd   :  { %v972_v50 = vadd.f32 %v909_v61, %v888_v55  ;;  %v973_v42 = vadd.f32 %v929_v54, %v889_v48  ;;  %v1045_v48 = vld [vmem:[#allocation4 + $0xd8] sm:$0xff] }
 0x3ff   :  { %v1406_v52 = vmul.f32 -1.442695, %v972_v50  ;;  %v1407_v63 = vmul.f32 -1.442695, %v973_v42 }
 0x401   :  { %1504 = vpow2.f32 %v1406_v52 }
 0x402   :  { %1506 = vpow2.f32 %v1407_v63 }
 0x403   :  { %v969_v0 = vpop.f32.mrf.mxu3  ;;  %v949_v58 = vpop.f32.mrf.mxu2 }
 0x404   :  { %v975_v41 = vadd.f32 %v969_v0, %v891_v57  ;;  %v974_v20 = vadd.f32 %v949_v58, %v890_v38  ;;  %v1044_v0 = vld [vmem:[#allocation4 + $0xd0] sm:$0xff] }
 0x406   :  { %v1408_v59 = vmul.f32 -1.442695, %v975_v41 }
 0x407   :  { %v1505_v4 = vpop.eup %1504 }
 0x408   :  { %v1507_v12 = vpop.eup %1506  ;;  %v979_v51 = vadd.f32 1.0, %v1505_v4  ;;  %1508 = vpow2.f32 %v1408_v59 }
 0x409   :  { %v998_v56 = vadd.f32 1.0, %v1507_v12 }
 0x40a   :  { %1510 = vrcp.f32 %v979_v51  ;;  %v991_v53 = vand.u32 2147483648, %v979_v51  ;;  %v989_v15 = vand.u32 2147483647, %v979_v51  ;;  %vm985_vm14 = vweird.f32 %v979_v51 }
 0x40b   :  { %1512 = vrcp.f32 %v998_v56  ;;  %v1010_v2 = vand.u32 2147483648, %v998_v56  ;;  %v1008_v8 = vand.u32 2147483647, %v998_v56  ;;  %vm1004_vm15 = vweird.f32 %v998_v56 }
 0x40c   :  { %v992_v18 = vor.u32 1.1754944e-38, %v991_v53  ;;  %vm990_vm2 = vcmp.eq.f32.partialorder %v989_v15, 8.507059e+37 }
 0x40d   :  { %v1011_v21 = vor.u32 1.1754944e-38, %v1010_v2  ;;  %vm1009_vm3 = vcmp.eq.f32.partialorder %v1008_v8, 8.507059e+37 }
 0x40e   :  { %v1509_v11 = vpop.eup %1508 }
 0x40f   :  { %v1018_v6 = vadd.f32 1.0, %v1509_v11 }
 0x410   :  { %v1511_v13 = vpop.eup %1510 }
 0x411   :  { %v1513_v17 = vpop.eup %1512  ;;  %v981_v9 = vmul.f32 %v1511_v13, %v979_v51  ;;  %1514 = vrcp.f32 %v1018_v6  ;;  %vm986_vm12 = vweird.f32 %v1511_v13  ;;  %v1030_v33 = vand.u32 2147483648, %v1018_v6 }
 0x412   :  { %v1000_v3 = vmul.f32 %v1513_v17, %v998_v56  ;;  %1516 = vtanh.f32 %v974_v20  ;;  %vm1005_vm13 = vweird.f32 %v1513_v17  ;;  %vm987_vm0 = vmor %vm985_vm14, %vm986_vm12  ;;  %vm1024_vm5 = vweird.f32 %v1018_v6 }
 0x413   :  { %v982_v16 = vsub.f32 1.0, %v981_v9  ;;  %vm1006_vm1 = vmor %vm1004_vm15, %vm1005_vm13  ;;  %v1028_v35 = vand.u32 2147483647, %v1018_v6  ;;  %v1031_v43 = vor.u32 1.1754944e-38, %v1030_v33 }
 0x414   :  { %v1001_v7 = vsub.f32 1.0, %v1000_v3 }
 0x415   :  { %v983_v19 = vmul.f32 %v1511_v13, %v982_v16  ;;  %vm1029_vm7 = vcmp.eq.f32.partialorder %v1028_v35, 8.507059e+37  ;;  %v1197_v35 = vld [vmem:[#allocation4 + $0xe8] sm:$0xff] }
 0x416   :  { %v1002_v45 = vmul.f32 %v1513_v17, %v1001_v7 }
 0x417   :  { %v1515_v14 = vpop.eup %1514  ;;  %v984_v5 = vadd.f32 %v1511_v13, %v983_v19 }
 0x418   :  { %v1003_v10 = vadd.f32 %v1513_v17, %v1002_v45  ;;  %v1020_v62 = vmul.f32 %v1515_v14, %v1018_v6  ;;  %v1517_v23 = vpop.eup %1516  ;;  %vm1025_vm4 = vweird.f32 %v1515_v14 }
 0x419   :  { %v988_v22 = vsel %vm987_vm0, %v1511_v13, %v984_v5  ;;  %vm1026_vm6 = vmor %vm1024_vm5, %vm1025_vm4 }
 0x41a   :  { %v993_v24 = vsel %vm990_vm2, %v992_v18, %v988_v22  ;;  %v1007_v25 = vsel %vm1006_vm1, %v1513_v17, %v1003_v10  ;;  %v1021_v26 = vsub.f32 1.0, %v1020_v62 }
 0x41b   :  { %v1012_v27 = vsel %vm1009_vm3, %v1011_v21, %v1007_v25  ;;  %v1035_v28 = vmul.f32 %v1517_v23, %v993_v24 }
 0x41c   :  { %v1034_v29 = vmul.f32 %v1012_v27, %v2475_v1  ;;  %v1022_v30 = vmul.f32 %v1515_v14, %v1021_v26  ;;  %v1042_v1 = vld [vmem:[#allocation4 + $0xc0] sm:$0xff] }
 0x41e   :  { %v2543_v31 = vadd.f32 %v1035_v28, %v1034_v29  ;;  %v1023_v32 = vadd.f32 %v1515_v14, %v1022_v30 }
 0x420   :  { %1518 = vtanh.f32 %v2543_v31  ;;  %v1027_v39 = vsel %vm1026_vm6, %v1515_v14, %v1023_v32 }
 0x421   :  { %v1032_v60 = vsel %vm1029_vm7, %v1031_v43, %v1027_v39 }
 0x426   :  { %v1519_v47 = vpop.eup %1518 }
 0x427   :  { %v1038_v44 = vmul.f32 %v1519_v47, %v1032_v60 }
 0x429   :  { %1040 = vst [vmem:[#allocation9 + $0x28] sm:$0xff] %v1038_v44  ;;  %1062 = vmatmul.f32.vlgmr.msra.gmra.mxu0 %v1038_v44  ;;  %1082 = vmatmul.f32.vlgmr.msra.gmra.mxu1 %v1038_v44 }
 0x42a   :  { %1102 = vmatmul.f32.vlgmr.msra.gmra.mxu2 %v1038_v44  ;;  %1122 = vmatmul.f32.vlgmr.msra.gmra.mxu3 %v1038_v44 }
 0x4a6   :  { %v1063_v36 = vpop.f32.mrf.mxu0  ;;  %v1083_v37 = vpop.f32.mrf.mxu1 }
 0x4a7   :  { %v1126_v40 = vadd.f32 %v1063_v36, %v1042_v1  ;;  %v1127_v49 = vadd.f32 %v1083_v37, %v1043_v34  ;;  %v1199_v34 = vld [vmem:[#allocation4 + $0xf8] sm:$0xff] }
 0x4a9   :  { %v1409_v46 = vmul.f32 -1.442695, %v1126_v40  ;;  %v1410_v55 = vmul.f32 -1.442695, %v1127_v49 }
 0x4ab   :  { %1520 = vpow2.f32 %v1409_v46 }
 0x4ac   :  { %1522 = vpow2.f32 %v1410_v55 }
 0x4ad   :  { %v1123_v61 = vpop.f32.mrf.mxu3  ;;  %v1103_v41 = vpop.f32.mrf.mxu2 }
 0x4ae   :  { %v1129_v54 = vadd.f32 %v1123_v61, %v1045_v48  ;;  %v1128_v51 = vadd.f32 %v1103_v41, %v1044_v0  ;;  %v1198_v61 = vld [vmem:[#allocation4 + $0xf0] sm:$0xff] }
 0x4b0   :  { %v1411_v50 = vmul.f32 -1.442695, %v1129_v54 }
 0x4b1   :  { %v1521_v42 = vpop.eup %1520 }
 0x4b2   :  { %v1523_v52 = vpop.eup %1522  ;;  %v1133_v63 = vadd.f32 1.0, %v1521_v42  ;;  %1524 = vpow2.f32 %v1411_v50 }
 0x4b3   :  { %v1152_v57 = vadd.f32 1.0, %v1523_v52 }
 0x4b4   :  { %1526 = vrcp.f32 %v1133_v63  ;;  %v1145_v13 = vand.u32 2147483648, %v1133_v63  ;;  %v1143_v9 = vand.u32 2147483647, %v1133_v63  ;;  %vm1139_vm10 = vweird.f32 %v1133_v63 }
 0x4b5   :  { %1528 = vrcp.f32 %v1152_v57  ;;  %v1164_v20 = vand.u32 2147483648, %v1152_v57  ;;  %v1162_v16 = vand.u32 2147483647, %v1152_v57  ;;  %vm1158_vm11 = vweird.f32 %v1152_v57 }
 0x4b6   :  { %v1146_v2 = vor.u32 1.1754944e-38, %v1145_v13  ;;  %vm1144_vm14 = vcmp.eq.f32.partialorder %v1143_v9, 8.507059e+37 }
 0x4b7   :  { %v1165_v45 = vor.u32 1.1754944e-38, %v1164_v20  ;;  %vm1163_vm15 = vcmp.eq.f32.partialorder %v1162_v16, 8.507059e+37 }
 0x4b8   :  { %v1525_v59 = vpop.eup %1524 }
 0x4b9   :  { %v1172_v4 = vadd.f32 1.0, %v1525_v59 }
 0x4ba   :  { %v1527_v12 = vpop.eup %1526 }
 0x4bb   :  { %v1529_v56 = vpop.eup %1528  ;;  %v1135_v38 = vmul.f32 %v1527_v12, %v1133_v63  ;;  %1530 = vrcp.f32 %v1172_v4  ;;  %vm1140_vm8 = vweird.f32 %v1527_v12  ;;  %v1184_v26 = vand.u32 2147483648, %v1172_v4 }
 0x4bc   :  { %v1154_v58 = vmul.f32 %v1529_v56, %v1152_v57  ;;  %1532 = vtanh.f32 %v1128_v51  ;;  %vm1159_vm9 = vweird.f32 %v1529_v56  ;;  %vm1141_vm12 = vmor %vm1139_vm10, %vm1140_vm8  ;;  %vm1178_vm1 = vweird.f32 %v1172_v4 }
 0x4bd   :  { %v1136_v11 = vsub.f32 1.0, %v1135_v38  ;;  %vm1160_vm13 = vmor %vm1158_vm11, %vm1159_vm9  ;;  %v1182_v27 = vand.u32 2147483647, %v1172_v4  ;;  %v1185_v29 = vor.u32 1.1754944e-38, %v1184_v26 }
 0x4be   :  { %v1155_v6 = vsub.f32 1.0, %v1154_v58 }
 0x4bf   :  { %v1137_v17 = vmul.f32 %v1527_v12, %v1136_v11  ;;  %vm1183_vm3 = vcmp.eq.f32.partialorder %v1182_v27, 8.507059e+37 }
 0x4c0   :  { %v1156_v3 = vmul.f32 %v1529_v56, %v1155_v6 }
 0x4c1   :  { %v1531_v7 = vpop.eup %1530  ;;  %v1138_v53 = vadd.f32 %v1527_v12, %v1137_v17 }
 0x4c2   :  { %v1157_v19 = vadd.f32 %v1529_v56, %v1156_v3  ;;  %v1174_v15 = vmul.f32 %v1531_v7, %v1172_v4  ;;  %v1533_v14 = vpop.eup %1532  ;;  %vm1179_vm0 = vweird.f32 %v1531_v7 }
 0x4c3   :  { %v1142_v8 = vsel %vm1141_vm12, %v1527_v12, %v1138_v53  ;;  %vm1180_vm2 = vmor %vm1178_vm1, %vm1179_vm0 }
 0x4c4   :  { %v1147_v5 = vsel %vm1144_vm14, %v1146_v2, %v1142_v8  ;;  %v1161_v18 = vsel %vm1160_vm13, %v1529_v56, %v1157_v19  ;;  %v1175_v10 = vsub.f32 1.0, %v1174_v15 }
 0x4c5   :  { %v1166_v62 = vsel %vm1163_vm15, %v1165_v45, %v1161_v18  ;;  %v1189_v21 = vmul.f32 %v1533_v14, %v1147_v5 }
 0x4c6   :  { %v1188_v22 = vmul.f32 %v1166_v62, %v2543_v31  ;;  %v1176_v23 = vmul.f32 %v1531_v7, %v1175_v10  ;;  %v1196_v31 = vld [vmem:[#allocation4 + $0xe0] sm:$0xff] }
 0x4c8   :  { %v2547_v24 = vadd.f32 %v1189_v21, %v1188_v22  ;;  %v1177_v25 = vadd.f32 %v1531_v7, %v1176_v23 }
 0x4ca   :  { %1534 = vtanh.f32 %v2547_v24  ;;  %v1181_v28 = vsel %vm1180_vm2, %v1531_v7, %v1177_v25 }
 0x4cb   :  { %v1186_v32 = vsel %vm1183_vm3, %v1185_v29, %v1181_v28 }
 0x4d0   :  { %v1535_v30 = vpop.eup %1534 }
 0x4d1   :  { %v1192_v33 = vmul.f32 %v1535_v30, %v1186_v32 }
 0x4d3   :  { %1194 = vst [vmem:[#allocation9 + $0x30] sm:$0xff] %v1192_v33  ;;  %1216 = vmatmul.f32.vlgmr.msrb.gmra.mxu0 %v1192_v33  ;;  %1236 = vmatmul.f32.vlgmr.msrb.gmra.mxu1 %v1192_v33 }
 0x4d4   :  { %1256 = vmatmul.f32.vlgmr.msrb.gmra.mxu2 %v1192_v33  ;;  %1276 = vmatmul.f32.vlgmr.msrb.gmra.mxu3 %v1192_v33 }
 0x550   :  { %v1217_v39 = vpop.f32.mrf.mxu0  ;;  %v1237_v43 = vpop.f32.mrf.mxu1 }
 0x551   :  { %v1280_v47 = vadd.f32 %v1217_v39, %v1196_v31  ;;  %v1281_v60 = vadd.f32 %v1237_v43, %v1197_v35 }
 0x553   :  { %v1412_v44 = vmul.f32 -1.442695, %v1280_v47  ;;  %v1413_v1 = vmul.f32 -1.442695, %v1281_v60 }
 0x555   :  { %1536 = vpow2.f32 %v1412_v44 }
 0x556   :  { %1538 = vpow2.f32 %v1413_v1 }
 0x557   :  { %v1277_v36 = vpop.f32.mrf.mxu3  ;;  %v1257_v54 = vpop.f32.mrf.mxu2 }
 0x558   :  { %v1283_v37 = vadd.f32 %v1277_v36, %v1199_v34  ;;  %v1282_v63 = vadd.f32 %v1257_v54, %v1198_v61 }
 0x55a   :  { %v1414_v40 = vmul.f32 -1.442695, %v1283_v37 }
 0x55b   :  { %v1537_v49 = vpop.eup %1536 }
 0x55c   :  { %v1539_v46 = vpop.eup %1538  ;;  %v1287_v55 = vadd.f32 1.0, %v1537_v49  ;;  %1540 = vpow2.f32 %v1414_v40 }
 0x55d   :  { %v1306_v48 = vadd.f32 1.0, %v1539_v46 }
 0x55e   :  { %1542 = vrcp.f32 %v1287_v55  ;;  %v1299_v12 = vand.u32 2147483648, %v1287_v55  ;;  %v1297_v38 = vand.u32 2147483647, %v1287_v55  ;;  %vm1293_vm6 = vweird.f32 %v1287_v55 }
 0x55f   :  { %1544 = vrcp.f32 %v1306_v48  ;;  %v1318_v51 = vand.u32 2147483648, %v1306_v48  ;;  %v1316_v11 = vand.u32 2147483647, %v1306_v48  ;;  %vm1312_vm7 = vweird.f32 %v1306_v48 }
 0x560   :  { %v1300_v20 = vor.u32 1.1754944e-38, %v1299_v12  ;;  %vm1298_vm10 = vcmp.eq.f32.partialorder %v1297_v38, 8.507059e+37 }
 0x561   :  { %v1319_v3 = vor.u32 1.1754944e-38, %v1318_v51  ;;  %vm1317_vm11 = vcmp.eq.f32.partialorder %v1316_v11, 8.507059e+37 }
 0x562   :  { %v1541_v50 = vpop.eup %1540 }
 0x563   :  { %v1326_v42 = vadd.f32 1.0, %v1541_v50 }
 0x564   :  { %v1543_v52 = vpop.eup %1542 }
 0x565   :  { %v1545_v57 = vpop.eup %1544  ;;  %v1289_v0 = vmul.f32 %v1543_v52, %v1287_v55  ;;  %1546 = vrcp.f32 %v1326_v42  ;;  %vm1294_vm4 = vweird.f32 %v1543_v52  ;;  %v1338_v10 = vand.u32 2147483648, %v1326_v42 }
 0x566   :  { %v1308_v41 = vmul.f32 %v1545_v57, %v1306_v48  ;;  %1548 = vtanh.f32 %v1282_v63  ;;  %vm1313_vm5 = vweird.f32 %v1545_v57  ;;  %vm1295_vm8 = vmor %vm1293_vm6, %vm1294_vm4  ;;  %vm1332_vm13 = vweird.f32 %v1326_v42 }
 0x567   :  { %v1290_v59 = vsub.f32 1.0, %v1289_v0  ;;  %vm1314_vm9 = vmor %vm1312_vm7, %vm1313_vm5  ;;  %v1336_v62 = vand.u32 2147483647, %v1326_v42  ;;  %v1339_v22 = vor.u32 1.1754944e-38, %v1338_v10 }
 0x568   :  { %v1309_v4 = vsub.f32 1.0, %v1308_v41 }
 0x569   :  { %v1291_v56 = vmul.f32 %v1543_v52, %v1290_v59  ;;  %vm1337_vm15 = vcmp.eq.f32.partialorder %v1336_v62, 8.507059e+37 }
 0x56a   :  { %v1310_v58 = vmul.f32 %v1545_v57, %v1309_v4 }
 0x56b   :  { %v1547_v6 = vpop.eup %1546  ;;  %v1292_v13 = vadd.f32 %v1543_v52, %v1291_v56 }
 0x56c   :  { %v1311_v17 = vadd.f32 %v1545_v57, %v1310_v58  ;;  %v1328_v9 = vmul.f32 %v1547_v6, %v1326_v42  ;;  %v1549_v7 = vpop.eup %1548  ;;  %vm1333_vm12 = vweird.f32 %v1547_v6 }
 0x56d   :  { %v1296_v16 = vsel %vm1295_vm8, %v1543_v52, %v1292_v13  ;;  %vm1334_vm14 = vmor %vm1332_vm13, %vm1333_vm12 }
 0x56e   :  { %v1301_v53 = vsel %vm1298_vm10, %v1300_v20, %v1296_v16  ;;  %v1315_v2 = vsel %vm1314_vm9, %v1545_v57, %v1311_v17  ;;  %v1329_v19 = vsub.f32 1.0, %v1328_v9 }
 0x56f   :  { %v1320_v15 = vsel %vm1317_vm11, %v1319_v3, %v1315_v2  ;;  %v1343_v45 = vmul.f32 %v1549_v7, %v1301_v53 }
 0x570   :  { %v1342_v8 = vmul.f32 %v1320_v15, %v2547_v24  ;;  %v1330_v14 = vmul.f32 %v1547_v6, %v1329_v19 }
 0x572   :  { %v1344_v5 = vadd.f32 %v1343_v45, %v1342_v8  ;;  %v1331_v18 = vadd.f32 %v1547_v6, %v1330_v14 }
 0x574   :  { %1550 = vtanh.f32 %v1344_v5  ;;  %1354 = vst [vmem:[#allocation10] sm:$0xff] %v1344_v5  ;;  %v1335_v21 = vsel %vm1334_vm14, %v1547_v6, %v1331_v18 }
 0x575   :  { %1378 = dma.vmem_to_hbm [thread:$0]  %s1374_s1, 128, %s1376_s26, [#allocation11]   ;;  %v1340_v24 = vsel %vm1337_vm15, %v1339_v22, %v1335_v21 }
 0x57a   :  { %v1551_v23 = vpop.eup %1550 }
 0x57b   :  { %v1346_v25 = vmul.f32 %v1551_v23, %v1340_v24 }
 0x57d   :  { %1348 = vst [vmem:[#allocation9 + $0x38] sm:$0xff] %v1346_v25 }
 0x57e   :  { %1367 = dma.vmem_to_hbm [thread:$0]  %s1360_s28, 1024, %s1362_s30, [#allocation6], %s1727_s4, %s1727_s4, %s1728_s5  }
 0x57f   :  { %1716 = dma.done.wait [#allocation6], 1024  }
 0x580   :  { %1717 = vsyncadd [#allocation6], 4294966272 }
 0x581   :  { %1718 = dma.done.wait [#allocation11], 128  }
 0x582   :  { %1719 = vsyncadd [#allocation11], 4294967168 }
 0x583   :  { %1387 = vsyncpa [#allocation5], 1 }
 0x584   :  { %1388 = vsyncpa [#allocation8], 1 }
 0x585   :  { %1389 = vsyncpa [#allocation6], 1 }
 0x586   :  { %1390 = vsyncpa [#allocation11], 1 }

</bundles_post_ra>
